<compile_context>
chip_gen: v7x
topology: tpu7x:2x2x1
jax: 0.10.0
libtpu: 0.0.40
codegen_flags: <defaults>
</compile_context>

<pallas_src>
import functools

import jax
import jax.numpy as jnp
from jax import lax
from jax.experimental import pallas as pl
from jax.experimental.pallas import tpu as pltpu


_TAPS = [(-1, -1), (-1, 0), (-1, 1),
         (0, -1), (0, 0), (0, 1),
         (1, -1), (1, 0), (1, 1)]


def _spatial_op_kernel(x_ref, wdw_ref, bias_ref, wpw_ref, o_ref, xpad_ref, *, W, PAD):
    # x_ref   : VMEM (NB, C, H*W)          flattened (lane-dense) input block
    # wdw_ref : SMEM (9*C,)                BN-folded depthwise weights, [tap*C + c]
    # bias_ref: SMEM (C,)                  BN-folded depthwise bias
    # wpw_ref : SMEM (C,)                  1x1 conv weights (out channels = 1)
    # o_ref   : VMEM (NB, C, H*W)
    # xpad_ref: VMEM (NB, C, PAD+H*W+PAD)  scratch holding the zero-halo'd strip
    NB, C, HW = x_ref.shape

    # Build the padded strip: zero halos (cover the vertical +-1 row taps), copy x.
    xpad_ref[:, :, :PAD] = jnp.zeros((NB, C, PAD), jnp.float32)
    xpad_ref[:, :, PAD + HW:] = jnp.zeros((NB, C, PAD), jnp.float32)
    xpad_ref[:, :, PAD:PAD + HW] = x_ref[...].astype(jnp.float32)

    # Column masks for the horizontal (dj = +-1) taps (hoisted out of the tap loop).
    col = lax.broadcasted_iota(jnp.int32, (1, HW), 1) % W
    not_first_col = (col != 0).astype(jnp.float32)       # valid lanes for dj = -1
    not_last_col = (col != W - 1).astype(jnp.float32)    # valid lanes for dj = +1

    attn_logit = None
    for c in range(C):   # C is small (module's `dim`); loops are statically unrolled
        acc = None
        for k, (di, dj) in enumerate(_TAPS):
            start = PAD + di * W + dj                    # static offset
            win = xpad_ref[:, c, start:start + HW]       # shifted window: Ref read
            if dj == -1:
                win = win * not_first_col
            elif dj == 1:
                win = win * not_last_col
            term = win * wdw_ref[k * C + c]              # SMEM scalar splat
            acc = term if acc is None else acc + term    # init with first tap
        y = jnp.maximum(acc + bias_ref[c], 0.0)          # folded BN bias + ReLU
        contrib = y * wpw_ref[c]                         # 1x1 conv (C -> 1), no bias
        attn_logit = contrib if attn_logit is None else attn_logit + contrib

    attn = jax.nn.sigmoid(attn_logit)                    # (NB, HW)

    # Gate the original input; per-channel lane-dense stores.
    for c in range(C):
        o_ref[:, c, :] = (x_ref[:, c, :] * attn).astype(o_ref.dtype)


def spatial_operation(x, w_dw, b_dw, gamma, beta, mean, var, w_pw, eps=1e-5):
    """x: (N, C, H, W) float32. Matches the PyTorch module with BatchNorm2d in
    eval mode (running stats mean/var, affine gamma/beta)."""
    N, C, H, W = x.shape
    HW = H * W

    # Fold BatchNorm (eval) into the depthwise conv:
    #   bn(dw(x) + b) = dw(x)*scale + (b*scale + beta - mean*scale)
    scale = gamma / jnp.sqrt(var + eps)
    w_eff = w_dw * scale[:, None, None]                       # (C, 3, 3)
    bias_eff = b_dw * scale + beta - mean * scale             # (C,)
    # tap-major flat layout: wdw_flat[(ki*3+kj)*C + c] = w_eff[c, ki, kj]
    wdw_flat = jnp.transpose(w_eff, (1, 2, 0)).reshape(-1)    # (9*C,)

    # Lane-aligned halo, big enough for the +-(W+1) flattened tap offsets.
    PAD = ((W + 1 + 127) // 128) * 128

    # Batch grouping: >=2 parallel grid steps (v7x megacore) with as much work per
    # step as that allows; otherwise one image per step.
    nb = N // 2 if (N >= 2 and N % 2 == 0) else 1
    grid = (N // nb,)
    # TODO(synk): for large C/H/W re-derive nb against v7x's 32 MiB scoped VMEM
    # (double-buffered blocks) and tile H with a 2-row halo instead of whole images.

    x_flat = x.reshape(N, C, HW)                              # free (row-major)

    kernel = functools.partial(_spatial_op_kernel, W=W, PAD=PAD)

    out = pl.pallas_call(
        kernel,
        out_shape=jax.ShapeDtypeStruct((N, C, HW), x.dtype),
        grid_spec=pltpu.PrefetchScalarGridSpec(
            num_scalar_prefetch=0,
            grid=grid,
            in_specs=[
                pl.BlockSpec((nb, C, HW), lambda g: (g, 0, 0)),
                pl.BlockSpec(memory_space=pltpu.MemorySpace.SMEM),
                pl.BlockSpec(memory_space=pltpu.MemorySpace.SMEM),
                pl.BlockSpec(memory_space=pltpu.MemorySpace.SMEM),
            ],
            out_specs=pl.BlockSpec((nb, C, HW), lambda g: (g, 0, 0)),
            scratch_shapes=[pltpu.VMEM((nb, C, PAD + HW + PAD), jnp.float32)],
        ),
        compiler_params=pltpu.CompilerParams(
            dimension_semantics=("parallel",)),
    )(x_flat, wdw_flat, bias_eff, w_pw)

    return out.reshape(N, C, H, W)


def reference(x, w_dw, b_dw, gamma, beta, mean, var, w_pw, eps=1e-5):
    """Pure-JAX reference matching PyTorch semantics (BN in eval mode)."""
    C = x.shape[1]
    dw = lax.conv_general_dilated(
        x, w_dw[:, None, :, :], window_strides=(1, 1), padding="SAME",
        feature_group_count=C, dimension_numbers=("NCHW", "OIHW", "NCHW"))
    dw = dw + b_dw[None, :, None, None]
    bn = (dw - mean[None, :, None, None]) / jnp.sqrt(var[None, :, None, None] + eps)
    bn = bn * gamma[None, :, None, None] + beta[None, :, None, None]
    r = jnp.maximum(bn, 0.0)
    pw = jnp.sum(r * w_pw[None, :, None, None], axis=1, keepdims=True)
    return x * jax.nn.sigmoid(pw)


if __name__ == "__main__":
    # Small shapes consistent with the module: dim (=C) = 4, batch 2, 16x16 spatial.
    N, C, H, W = 2, 4, 16, 16
    key = jax.random.PRNGKey(0)
    kx, kw, kb, kg, kbeta, km, kv, kp = jax.random.split(key, 8)

    x = jax.random.normal(kx, (N, C, H, W), jnp.float32)

    # Deterministic synthetic parameters (shapes from the module's __init__).
    w_dw = jax.random.normal(kw, (C, 3, 3), jnp.float32) * 0.2     # Conv2d(dim,dim,3,groups=dim) weight (C,1,3,3) squeezed
    b_dw = jax.random.normal(kb, (C,), jnp.float32) * 0.1          # its bias
    gamma = 1.0 + 0.1 * jax.random.normal(kg, (C,), jnp.float32)   # BatchNorm2d weight
    beta = 0.1 * jax.random.normal(kbeta, (C,), jnp.float32)       # BatchNorm2d bias
    mean = 0.1 * jax.random.normal(km, (C,), jnp.float32)          # running_mean
    var = jnp.abs(jax.random.normal(kv, (C,), jnp.float32)) + 0.5  # running_var
    w_pw = jax.random.normal(kp, (C,), jnp.float32) * 0.3          # Conv2d(dim,1,1,bias=False) weight (1,C,1,1) squeezed
    # TODO(synk): PyTorch BatchNorm2d in training mode uses batch statistics; eval-mode running stats are implemented here.

    out = spatial_operation(x, w_dw, b_dw, gamma, beta, mean, var, w_pw)
    out = jax.block_until_ready(out)

    ref = reference(x, w_dw, b_dw, gamma, beta, mean, var, w_pw)
    assert out.shape == (N, C, H, W)
    assert jnp.allclose(out, ref, atol=1e-5, rtol=1e-5), "mismatch vs reference"

    print("KERNEL_OK")
</pallas_src>

<mosaic_0001>
module attributes {stable_mosaic.version = 11 : i64} {
  func.func @_spatial_op_kernel(%arg0: i32, %arg1: memref<1x4x256xf32, #tpu.memory_space<vmem>>, %arg2: memref<36xf32, #tpu.memory_space<smem>>, %arg3: memref<4xf32, #tpu.memory_space<smem>>, %arg4: memref<4xf32, #tpu.memory_space<smem>>, %arg5: memref<1x4x256xf32, #tpu.memory_space<vmem>>, %arg6: memref<1x4x512xf32, #tpu.memory_space<vmem>>) attributes {dimension_semantics = [#tpu.dimension_semantics<parallel>], iteration_bounds = array<i64: 2>, scalar_prefetch = 0 : i64, scratch_operands = 1 : i64, tpu.core_type = #tpu.core_type<tc>, window_params = [{transform_indices = @transform_0, window_bounds = array<i64: 1, 4, 256>}, {transform_indices = @transform_1, window_bounds = array<i64: 36>}, {transform_indices = @transform_2, window_bounds = array<i64: 4>}, {transform_indices = @transform_3, window_bounds = array<i64: 4>}, {transform_indices = @transform_4, window_bounds = array<i64: 1, 4, 256>}]} {
    %cst = arith.constant 0.000000e+00 : f32
    %0 = vector.broadcast %cst : f32 to vector<1x4x128xf32>
    %c0 = arith.constant 0 : index
    %c0_0 = arith.constant 0 : index
    %c0_1 = arith.constant 0 : index
    %1 = vector.load %arg6[%c0, %c0_0, %c0_1] : memref<1x4x512xf32, #tpu.memory_space<vmem>>, vector<1x4x128xf32>
    tpu.vector_store %arg6[%c0, %c0_0, %c0_1], %0 {strides = array<i32>} : memref<1x4x512xf32, #tpu.memory_space<vmem>>, vector<1x4x128xf32>,
    %cst_2 = arith.constant 0.000000e+00 : f32
    %2 = vector.broadcast %cst_2 : f32 to vector<1x4x128xf32>
    %c0_3 = arith.constant 0 : index
    %c0_4 = arith.constant 0 : index
    %c384 = arith.constant 384 : index
    %3 = vector.load %arg6[%c0_3, %c0_4, %c384] : memref<1x4x512xf32, #tpu.memory_space<vmem>>, vector<1x4x128xf32>
    tpu.vector_store %arg6[%c0_3, %c0_4, %c384], %2 {strides = array<i32>} : memref<1x4x512xf32, #tpu.memory_space<vmem>>, vector<1x4x128xf32>,
    %c0_5 = arith.constant 0 : index
    %c0_6 = arith.constant 0 : index
    %c0_7 = arith.constant 0 : index
    %4 = vector.load %arg1[%c0_5, %c0_6, %c0_7] : memref<1x4x256xf32, #tpu.memory_space<vmem>>, vector<1x4x256xf32>
    %c0_8 = arith.constant 0 : index
    %c0_9 = arith.constant 0 : index
    %c128 = arith.constant 128 : index
    %5 = vector.load %arg6[%c0_8, %c0_9, %c128] : memref<1x4x512xf32, #tpu.memory_space<vmem>>, vector<1x4x256xf32>
    tpu.vector_store %arg6[%c0_8, %c0_9, %c128], %4 {strides = array<i32>} : memref<1x4x512xf32, #tpu.memory_space<vmem>>, vector<1x4x256xf32>,
    %6 = tpu.iota {dimensions = array<i32: 1>} : vector<1x256xi32>
    %c16_i32 = arith.constant 16 : i32
    %c0_i32 = arith.constant 0 : i32
    %7 = arith.cmpi eq, %c16_i32, %c0_i32 : i32
    %c1_i32 = arith.constant 1 : i32
    %8 = arith.select %7, %c1_i32, %c16_i32 : i32
    %9 = vector.broadcast %8 : i32 to vector<1x256xi32>
    %10 = arith.remsi %6, %9 : vector<1x256xi32>
    %c0_i32_10 = arith.constant 0 : i32
    %11 = vector.broadcast %c0_i32_10 : i32 to vector<1x256xi32>
    %12 = arith.cmpi ne, %10, %11 : vector<1x256xi32>
    %c0_i32_11 = arith.constant 0 : i32
    %13 = vector.broadcast %c0_i32_11 : i32 to vector<1x256xi32>
    %14 = arith.cmpi slt, %10, %13 : vector<1x256xi32>
    %c0_i32_12 = arith.constant 0 : i32
    %15 = arith.cmpi slt, %8, %c0_i32_12 : i32
    %16 = vector.broadcast %15 : i1 to vector<1x256xi1>
    %17 = vector.broadcast %16 : vector<1x256xi1> to vector<1x256xi1>
    %18 = arith.xori %14, %17 : vector<1x256xi1>
    %19 = arith.andi %18, %12 : vector<1x256xi1>
    %20 = vector.broadcast %8 : i32 to vector<1x256xi32>
    %21 = arith.addi %10, %20 : vector<1x256xi32>
    %22 = arith.select %19, %21, %10 : vector<1x256xi1>, vector<1x256xi32>
    %c0_i32_13 = arith.constant 0 : i32
    %23 = vector.broadcast %c0_i32_13 : i32 to vector<1x256xi32>
    %24 = arith.cmpi ne, %22, %23 : vector<1x256xi32>
    %25 = arith.extui %24 : vector<1x256xi1> to vector<1x256xi32>
    %26 = arith.sitofp %25 : vector<1x256xi32> to vector<1x256xf32>
    %c15_i32 = arith.constant 15 : i32
    %27 = vector.broadcast %c15_i32 : i32 to vector<1x256xi32>
    %28 = arith.cmpi ne, %22, %27 : vector<1x256xi32>
    %29 = arith.extui %28 : vector<1x256xi1> to vector<1x256xi32>
    %30 = arith.sitofp %29 : vector<1x256xi32> to vector<1x256xf32>
    %c0_14 = arith.constant 0 : index
    %c0_15 = arith.constant 0 : index
    %c111 = arith.constant 111 : index
    %31 = vector.load %arg6[%c0_14, %c0_15, %c111] : memref<1x4x512xf32, #tpu.memory_space<vmem>>, vector<1x1x256xf32>
    %32 = vector.shape_cast %31 : vector<1x1x256xf32> to vector<1x256xf32>
    %33 = arith.mulf %32, %26 : vector<1x256xf32>
    %c0_16 = arith.constant 0 : index
    %34 = memref.load %arg2[%c0_16] : memref<36xf32, #tpu.memory_space<smem>>
    %35 = vector.broadcast %34 : f32 to vector<1x256xf32>
    %36 = arith.mulf %33, %35 : vector<1x256xf32>
    %c0_17 = arith.constant 0 : index
    %c0_18 = arith.constant 0 : index
    %c112 = arith.constant 112 : index
    %37 = vector.load %arg6[%c0_17, %c0_18, %c112] : memref<1x4x512xf32, #tpu.memory_space<vmem>>, vector<1x1x256xf32>
    %38 = vector.shape_cast %37 : vector<1x1x256xf32> to vector<1x256xf32>
    %c4 = arith.constant 4 : index
    %39 = memref.load %arg2[%c4] : memref<36xf32, #tpu.memory_space<smem>>
    %40 = vector.broadcast %39 : f32 to vector<1x256xf32>
    %41 = arith.mulf %38, %40 : vector<1x256xf32>
    %42 = arith.addf %36, %41 : vector<1x256xf32>
    %c0_19 = arith.constant 0 : index
    %c0_20 = arith.constant 0 : index
    %c113 = arith.constant 113 : index
    %43 = vector.load %arg6[%c0_19, %c0_20, %c113] : memref<1x4x512xf32, #tpu.memory_space<vmem>>, vector<1x1x256xf32>
    %44 = vector.shape_cast %43 : vector<1x1x256xf32> to vector<1x256xf32>
    %45 = arith.mulf %44, %30 : vector<1x256xf32>
    %c8 = arith.constant 8 : index
    %46 = memref.load %arg2[%c8] : memref<36xf32, #tpu.memory_space<smem>>
    %47 = vector.broadcast %46 : f32 to vector<1x256xf32>
    %48 = arith.mulf %45, %47 : vector<1x256xf32>
    %49 = arith.addf %42, %48 : vector<1x256xf32>
    %c0_21 = arith.constant 0 : index
    %c0_22 = arith.constant 0 : index
    %c127 = arith.constant 127 : index
    %50 = vector.load %arg6[%c0_21, %c0_22, %c127] : memref<1x4x512xf32, #tpu.memory_space<vmem>>, vector<1x1x256xf32>
    %51 = vector.shape_cast %50 : vector<1x1x256xf32> to vector<1x256xf32>
    %52 = arith.mulf %51, %26 : vector<1x256xf32>
    %c12 = arith.constant 12 : index
    %53 = memref.load %arg2[%c12] : memref<36xf32, #tpu.memory_space<smem>>
    %54 = vector.broadcast %53 : f32 to vector<1x256xf32>
    %55 = arith.mulf %52, %54 : vector<1x256xf32>
    %56 = arith.addf %49, %55 : vector<1x256xf32>
    %c0_23 = arith.constant 0 : index
    %c0_24 = arith.constant 0 : index
    %c128_25 = arith.constant 128 : index
    %57 = vector.load %arg6[%c0_23, %c0_24, %c128_25] : memref<1x4x512xf32, #tpu.memory_space<vmem>>, vector<1x1x256xf32>
    %58 = vector.shape_cast %57 : vector<1x1x256xf32> to vector<1x256xf32>
    %c16 = arith.constant 16 : index
    %59 = memref.load %arg2[%c16] : memref<36xf32, #tpu.memory_space<smem>>
    %60 = vector.broadcast %59 : f32 to vector<1x256xf32>
    %61 = arith.mulf %58, %60 : vector<1x256xf32>
    %62 = arith.addf %56, %61 : vector<1x256xf32>
    %c0_26 = arith.constant 0 : index
    %c0_27 = arith.constant 0 : index
    %c129 = arith.constant 129 : index
    %63 = vector.load %arg6[%c0_26, %c0_27, %c129] : memref<1x4x512xf32, #tpu.memory_space<vmem>>, vector<1x1x256xf32>
    %64 = vector.shape_cast %63 : vector<1x1x256xf32> to vector<1x256xf32>
    %65 = arith.mulf %64, %30 : vector<1x256xf32>
    %c20 = arith.constant 20 : index
    %66 = memref.load %arg2[%c20] : memref<36xf32, #tpu.memory_space<smem>>
    %67 = vector.broadcast %66 : f32 to vector<1x256xf32>
    %68 = arith.mulf %65, %67 : vector<1x256xf32>
    %69 = arith.addf %62, %68 : vector<1x256xf32>
    %c0_28 = arith.constant 0 : index
    %c0_29 = arith.constant 0 : index
    %c143 = arith.constant 143 : index
    %70 = vector.load %arg6[%c0_28, %c0_29, %c143] : memref<1x4x512xf32, #tpu.memory_space<vmem>>, vector<1x1x256xf32>
    %71 = vector.shape_cast %70 : vector<1x1x256xf32> to vector<1x256xf32>
    %72 = arith.mulf %71, %26 : vector<1x256xf32>
    %c24 = arith.constant 24 : index
    %73 = memref.load %arg2[%c24] : memref<36xf32, #tpu.memory_space<smem>>
    %74 = vector.broadcast %73 : f32 to vector<1x256xf32>
    %75 = arith.mulf %72, %74 : vector<1x256xf32>
    %76 = arith.addf %69, %75 : vector<1x256xf32>
    %c0_30 = arith.constant 0 : index
    %c0_31 = arith.constant 0 : index
    %c144 = arith.constant 144 : index
    %77 = vector.load %arg6[%c0_30, %c0_31, %c144] : memref<1x4x512xf32, #tpu.memory_space<vmem>>, vector<1x1x256xf32>
    %78 = vector.shape_cast %77 : vector<1x1x256xf32> to vector<1x256xf32>
    %c28 = arith.constant 28 : index
    %79 = memref.load %arg2[%c28] : memref<36xf32, #tpu.memory_space<smem>>
    %80 = vector.broadcast %79 : f32 to vector<1x256xf32>
    %81 = arith.mulf %78, %80 : vector<1x256xf32>
    %82 = arith.addf %76, %81 : vector<1x256xf32>
    %c0_32 = arith.constant 0 : index
    %c0_33 = arith.constant 0 : index
    %c145 = arith.constant 145 : index
    %83 = vector.load %arg6[%c0_32, %c0_33, %c145] : memref<1x4x512xf32, #tpu.memory_space<vmem>>, vector<1x1x256xf32>
    %84 = vector.shape_cast %83 : vector<1x1x256xf32> to vector<1x256xf32>
    %85 = arith.mulf %84, %30 : vector<1x256xf32>
    %c32 = arith.constant 32 : index
    %86 = memref.load %arg2[%c32] : memref<36xf32, #tpu.memory_space<smem>>
    %87 = vector.broadcast %86 : f32 to vector<1x256xf32>
    %88 = arith.mulf %85, %87 : vector<1x256xf32>
    %89 = arith.addf %82, %88 : vector<1x256xf32>
    %c0_34 = arith.constant 0 : index
    %90 = memref.load %arg3[%c0_34] : memref<4xf32, #tpu.memory_space<smem>>
    %91 = vector.broadcast %90 : f32 to vector<1x256xf32>
    %92 = arith.addf %89, %91 : vector<1x256xf32>
    %cst_35 = arith.constant 0.000000e+00 : f32
    %93 = vector.broadcast %cst_35 : f32 to vector<1x256xf32>
    %94 = arith.maximumf %92, %93 : vector<1x256xf32>
    %c0_36 = arith.constant 0 : index
    %95 = memref.load %arg4[%c0_36] : memref<4xf32, #tpu.memory_space<smem>>
    %96 = vector.broadcast %95 : f32 to vector<1x256xf32>
    %97 = arith.mulf %94, %96 : vector<1x256xf32>
    %c0_37 = arith.constant 0 : index
    %c1 = arith.constant 1 : index
    %c111_38 = arith.constant 111 : index
    %98 = vector.load %arg6[%c0_37, %c1, %c111_38] : memref<1x4x512xf32, #tpu.memory_space<vmem>>, vector<1x1x256xf32>
    %99 = vector.shape_cast %98 : vector<1x1x256xf32> to vector<1x256xf32>
    %100 = arith.mulf %99, %26 : vector<1x256xf32>
    %c1_39 = arith.constant 1 : index
    %101 = memref.load %arg2[%c1_39] : memref<36xf32, #tpu.memory_space<smem>>
    %102 = vector.broadcast %101 : f32 to vector<1x256xf32>
    %103 = arith.mulf %100, %102 : vector<1x256xf32>
    %c0_40 = arith.constant 0 : index
    %c1_41 = arith.constant 1 : index
    %c112_42 = arith.constant 112 : index
    %104 = vector.load %arg6[%c0_40, %c1_41, %c112_42] : memref<1x4x512xf32, #tpu.memory_space<vmem>>, vector<1x1x256xf32>
    %105 = vector.shape_cast %104 : vector<1x1x256xf32> to vector<1x256xf32>
    %c5 = arith.constant 5 : index
    %106 = memref.load %arg2[%c5] : memref<36xf32, #tpu.memory_space<smem>>
    %107 = vector.broadcast %106 : f32 to vector<1x256xf32>
    %108 = arith.mulf %105, %107 : vector<1x256xf32>
    %109 = arith.addf %103, %108 : vector<1x256xf32>
    %c0_43 = arith.constant 0 : index
    %c1_44 = arith.constant 1 : index
    %c113_45 = arith.constant 113 : index
    %110 = vector.load %arg6[%c0_43, %c1_44, %c113_45] : memref<1x4x512xf32, #tpu.memory_space<vmem>>, vector<1x1x256xf32>
    %111 = vector.shape_cast %110 : vector<1x1x256xf32> to vector<1x256xf32>
    %112 = arith.mulf %111, %30 : vector<1x256xf32>
    %c9 = arith.constant 9 : index
    %113 = memref.load %arg2[%c9] : memref<36xf32, #tpu.memory_space<smem>>
    %114 = vector.broadcast %113 : f32 to vector<1x256xf32>
    %115 = arith.mulf %112, %114 : vector<1x256xf32>
    %116 = arith.addf %109, %115 : vector<1x256xf32>
    %c0_46 = arith.constant 0 : index
    %c1_47 = arith.constant 1 : index
    %c127_48 = arith.constant 127 : index
    %117 = vector.load %arg6[%c0_46, %c1_47, %c127_48] : memref<1x4x512xf32, #tpu.memory_space<vmem>>, vector<1x1x256xf32>
    %118 = vector.shape_cast %117 : vector<1x1x256xf32> to vector<1x256xf32>
    %119 = arith.mulf %118, %26 : vector<1x256xf32>
    %c13 = arith.constant 13 : index
    %120 = memref.load %arg2[%c13] : memref<36xf32, #tpu.memory_space<smem>>
    %121 = vector.broadcast %120 : f32 to vector<1x256xf32>
    %122 = arith.mulf %119, %121 : vector<1x256xf32>
    %123 = arith.addf %116, %122 : vector<1x256xf32>
    %c0_49 = arith.constant 0 : index
    %c1_50 = arith.constant 1 : index
    %c128_51 = arith.constant 128 : index
    %124 = vector.load %arg6[%c0_49, %c1_50, %c128_51] : memref<1x4x512xf32, #tpu.memory_space<vmem>>, vector<1x1x256xf32>
    %125 = vector.shape_cast %124 : vector<1x1x256xf32> to vector<1x256xf32>
    %c17 = arith.constant 17 : index
    %126 = memref.load %arg2[%c17] : memref<36xf32, #tpu.memory_space<smem>>
    %127 = vector.broadcast %126 : f32 to vector<1x256xf32>
    %128 = arith.mulf %125, %127 : vector<1x256xf32>
    %129 = arith.addf %123, %128 : vector<1x256xf32>
    %c0_52 = arith.constant 0 : index
    %c1_53 = arith.constant 1 : index
    %c129_54 = arith.constant 129 : index
    %130 = vector.load %arg6[%c0_52, %c1_53, %c129_54] : memref<1x4x512xf32, #tpu.memory_space<vmem>>, vector<1x1x256xf32>
    %131 = vector.shape_cast %130 : vector<1x1x256xf32> to vector<1x256xf32>
    %132 = arith.mulf %131, %30 : vector<1x256xf32>
    %c21 = arith.constant 21 : index
    %133 = memref.load %arg2[%c21] : memref<36xf32, #tpu.memory_space<smem>>
    %134 = vector.broadcast %133 : f32 to vector<1x256xf32>
    %135 = arith.mulf %132, %134 : vector<1x256xf32>
    %136 = arith.addf %129, %135 : vector<1x256xf32>
    %c0_55 = arith.constant 0 : index
    %c1_56 = arith.constant 1 : index
    %c143_57 = arith.constant 143 : index
    %137 = vector.load %arg6[%c0_55, %c1_56, %c143_57] : memref<1x4x512xf32, #tpu.memory_space<vmem>>, vector<1x1x256xf32>
    %138 = vector.shape_cast %137 : vector<1x1x256xf32> to vector<1x256xf32>
    %139 = arith.mulf %138, %26 : vector<1x256xf32>
    %c25 = arith.constant 25 : index
    %140 = memref.load %arg2[%c25] : memref<36xf32, #tpu.memory_space<smem>>
    %141 = vector.broadcast %140 : f32 to vector<1x256xf32>
    %142 = arith.mulf %139, %141 : vector<1x256xf32>
    %143 = arith.addf %136, %142 : vector<1x256xf32>
    %c0_58 = arith.constant 0 : index
    %c1_59 = arith.constant 1 : index
    %c144_60 = arith.constant 144 : index
    %144 = vector.load %arg6[%c0_58, %c1_59, %c144_60] : memref<1x4x512xf32, #tpu.memory_space<vmem>>, vector<1x1x256xf32>
    %145 = vector.shape_cast %144 : vector<1x1x256xf32> to vector<1x256xf32>
    %c29 = arith.constant 29 : index
    %146 = memref.load %arg2[%c29] : memref<36xf32, #tpu.memory_space<smem>>
    %147 = vector.broadcast %146 : f32 to vector<1x256xf32>
    %148 = arith.mulf %145, %147 : vector<1x256xf32>
    %149 = arith.addf %143, %148 : vector<1x256xf32>
    %c0_61 = arith.constant 0 : index
    %c1_62 = arith.constant 1 : index
    %c145_63 = arith.constant 145 : index
    %150 = vector.load %arg6[%c0_61, %c1_62, %c145_63] : memref<1x4x512xf32, #tpu.memory_space<vmem>>, vector<1x1x256xf32>
    %151 = vector.shape_cast %150 : vector<1x1x256xf32> to vector<1x256xf32>
    %152 = arith.mulf %151, %30 : vector<1x256xf32>
    %c33 = arith.constant 33 : index
    %153 = memref.load %arg2[%c33] : memref<36xf32, #tpu.memory_space<smem>>
    %154 = vector.broadcast %153 : f32 to vector<1x256xf32>
    %155 = arith.mulf %152, %154 : vector<1x256xf32>
    %156 = arith.addf %149, %155 : vector<1x256xf32>
    %c1_64 = arith.constant 1 : index
    %157 = memref.load %arg3[%c1_64] : memref<4xf32, #tpu.memory_space<smem>>
    %158 = vector.broadcast %157 : f32 to vector<1x256xf32>
    %159 = arith.addf %156, %158 : vector<1x256xf32>
    %cst_65 = arith.constant 0.000000e+00 : f32
    %160 = vector.broadcast %cst_65 : f32 to vector<1x256xf32>
    %161 = arith.maximumf %159, %160 : vector<1x256xf32>
    %c1_66 = arith.constant 1 : index
    %162 = memref.load %arg4[%c1_66] : memref<4xf32, #tpu.memory_space<smem>>
    %163 = vector.broadcast %162 : f32 to vector<1x256xf32>
    %164 = arith.mulf %161, %163 : vector<1x256xf32>
    %165 = arith.addf %97, %164 : vector<1x256xf32>
    %c0_67 = arith.constant 0 : index
    %c2 = arith.constant 2 : index
    %c111_68 = arith.constant 111 : index
    %166 = vector.load %arg6[%c0_67, %c2, %c111_68] : memref<1x4x512xf32, #tpu.memory_space<vmem>>, vector<1x1x256xf32>
    %167 = vector.shape_cast %166 : vector<1x1x256xf32> to vector<1x256xf32>
    %168 = arith.mulf %167, %26 : vector<1x256xf32>
    %c2_69 = arith.constant 2 : index
    %169 = memref.load %arg2[%c2_69] : memref<36xf32, #tpu.memory_space<smem>>
    %170 = vector.broadcast %169 : f32 to vector<1x256xf32>
    %171 = arith.mulf %168, %170 : vector<1x256xf32>
    %c0_70 = arith.constant 0 : index
    %c2_71 = arith.constant 2 : index
    %c112_72 = arith.constant 112 : index
    %172 = vector.load %arg6[%c0_70, %c2_71, %c112_72] : memref<1x4x512xf32, #tpu.memory_space<vmem>>, vector<1x1x256xf32>
    %173 = vector.shape_cast %172 : vector<1x1x256xf32> to vector<1x256xf32>
    %c6 = arith.constant 6 : index
    %174 = memref.load %arg2[%c6] : memref<36xf32, #tpu.memory_space<smem>>
    %175 = vector.broadcast %174 : f32 to vector<1x256xf32>
    %176 = arith.mulf %173, %175 : vector<1x256xf32>
    %177 = arith.addf %171, %176 : vector<1x256xf32>
    %c0_73 = arith.constant 0 : index
    %c2_74 = arith.constant 2 : index
    %c113_75 = arith.constant 113 : index
    %178 = vector.load %arg6[%c0_73, %c2_74, %c113_75] : memref<1x4x512xf32, #tpu.memory_space<vmem>>, vector<1x1x256xf32>
    %179 = vector.shape_cast %178 : vector<1x1x256xf32> to vector<1x256xf32>
    %180 = arith.mulf %179, %30 : vector<1x256xf32>
    %c10 = arith.constant 10 : index
    %181 = memref.load %arg2[%c10] : memref<36xf32, #tpu.memory_space<smem>>
    %182 = vector.broadcast %181 : f32 to vector<1x256xf32>
    %183 = arith.mulf %180, %182 : vector<1x256xf32>
    %184 = arith.addf %177, %183 : vector<1x256xf32>
    %c0_76 = arith.constant 0 : index
    %c2_77 = arith.constant 2 : index
    %c127_78 = arith.constant 127 : index
    %185 = vector.load %arg6[%c0_76, %c2_77, %c127_78] : memref<1x4x512xf32, #tpu.memory_space<vmem>>, vector<1x1x256xf32>
    %186 = vector.shape_cast %185 : vector<1x1x256xf32> to vector<1x256xf32>
    %187 = arith.mulf %186, %26 : vector<1x256xf32>
    %c14 = arith.constant 14 : index
    %188 = memref.load %arg2[%c14] : memref<36xf32, #tpu.memory_space<smem>>
    %189 = vector.broadcast %188 : f32 to vector<1x256xf32>
    %190 = arith.mulf %187, %189 : vector<1x256xf32>
    %191 = arith.addf %184, %190 : vector<1x256xf32>
    %c0_79 = arith.constant 0 : index
    %c2_80 = arith.constant 2 : index
    %c128_81 = arith.constant 128 : index
    %192 = vector.load %arg6[%c0_79, %c2_80, %c128_81] : memref<1x4x512xf32, #tpu.memory_space<vmem>>, vector<1x1x256xf32>
    %193 = vector.shape_cast %192 : vector<1x1x256xf32> to vector<1x256xf32>
    %c18 = arith.constant 18 : index
    %194 = memref.load %arg2[%c18] : memref<36xf32, #tpu.memory_space<smem>>
    %195 = vector.broadcast %194 : f32 to vector<1x256xf32>
    %196 = arith.mulf %193, %195 : vector<1x256xf32>
    %197 = arith.addf %191, %196 : vector<1x256xf32>
    %c0_82 = arith.constant 0 : index
    %c2_83 = arith.constant 2 : index
    %c129_84 = arith.constant 129 : index
    %198 = vector.load %arg6[%c0_82, %c2_83, %c129_84] : memref<1x4x512xf32, #tpu.memory_space<vmem>>, vector<1x1x256xf32>
    %199 = vector.shape_cast %198 : vector<1x1x256xf32> to vector<1x256xf32>
    %200 = arith.mulf %199, %30 : vector<1x256xf32>
    %c22 = arith.constant 22 : index
    %201 = memref.load %arg2[%c22] : memref<36xf32, #tpu.memory_space<smem>>
    %202 = vector.broadcast %201 : f32 to vector<1x256xf32>
    %203 = arith.mulf %200, %202 : vector<1x256xf32>
    %204 = arith.addf %197, %203 : vector<1x256xf32>
    %c0_85 = arith.constant 0 : index
    %c2_86 = arith.constant 2 : index
    %c143_87 = arith.constant 143 : index
    %205 = vector.load %arg6[%c0_85, %c2_86, %c143_87] : memref<1x4x512xf32, #tpu.memory_space<vmem>>, vector<1x1x256xf32>
    %206 = vector.shape_cast %205 : vector<1x1x256xf32> to vector<1x256xf32>
    %207 = arith.mulf %206, %26 : vector<1x256xf32>
    %c26 = arith.constant 26 : index
    %208 = memref.load %arg2[%c26] : memref<36xf32, #tpu.memory_space<smem>>
    %209 = vector.broadcast %208 : f32 to vector<1x256xf32>
    %210 = arith.mulf %207, %209 : vector<1x256xf32>
    %211 = arith.addf %204, %210 : vector<1x256xf32>
    %c0_88 = arith.constant 0 : index
    %c2_89 = arith.constant 2 : index
    %c144_90 = arith.constant 144 : index
    %212 = vector.load %arg6[%c0_88, %c2_89, %c144_90] : memref<1x4x512xf32, #tpu.memory_space<vmem>>, vector<1x1x256xf32>
    %213 = vector.shape_cast %212 : vector<1x1x256xf32> to vector<1x256xf32>
    %c30 = arith.constant 30 : index
    %214 = memref.load %arg2[%c30] : memref<36xf32, #tpu.memory_space<smem>>
    %215 = vector.broadcast %214 : f32 to vector<1x256xf32>
    %216 = arith.mulf %213, %215 : vector<1x256xf32>
    %217 = arith.addf %211, %216 : vector<1x256xf32>
    %c0_91 = arith.constant 0 : index
    %c2_92 = arith.constant 2 : index
    %c145_93 = arith.constant 145 : index
    %218 = vector.load %arg6[%c0_91, %c2_92, %c145_93] : memref<1x4x512xf32, #tpu.memory_space<vmem>>, vector<1x1x256xf32>
    %219 = vector.shape_cast %218 : vector<1x1x256xf32> to vector<1x256xf32>
    %220 = arith.mulf %219, %30 : vector<1x256xf32>
    %c34 = arith.constant 34 : index
    %221 = memref.load %arg2[%c34] : memref<36xf32, #tpu.memory_space<smem>>
    %222 = vector.broadcast %221 : f32 to vector<1x256xf32>
    %223 = arith.mulf %220, %222 : vector<1x256xf32>
    %224 = arith.addf %217, %223 : vector<1x256xf32>
    %c2_94 = arith.constant 2 : index
    %225 = memref.load %arg3[%c2_94] : memref<4xf32, #tpu.memory_space<smem>>
    %226 = vector.broadcast %225 : f32 to vector<1x256xf32>
    %227 = arith.addf %224, %226 : vector<1x256xf32>
    %cst_95 = arith.constant 0.000000e+00 : f32
    %228 = vector.broadcast %cst_95 : f32 to vector<1x256xf32>
    %229 = arith.maximumf %227, %228 : vector<1x256xf32>
    %c2_96 = arith.constant 2 : index
    %230 = memref.load %arg4[%c2_96] : memref<4xf32, #tpu.memory_space<smem>>
    %231 = vector.broadcast %230 : f32 to vector<1x256xf32>
    %232 = arith.mulf %229, %231 : vector<1x256xf32>
    %233 = arith.addf %165, %232 : vector<1x256xf32>
    %c0_97 = arith.constant 0 : index
    %c3 = arith.constant 3 : index
    %c111_98 = arith.constant 111 : index
    %234 = vector.load %arg6[%c0_97, %c3, %c111_98] : memref<1x4x512xf32, #tpu.memory_space<vmem>>, vector<1x1x256xf32>
    %235 = vector.shape_cast %234 : vector<1x1x256xf32> to vector<1x256xf32>
    %236 = arith.mulf %235, %26 : vector<1x256xf32>
    %c3_99 = arith.constant 3 : index
    %237 = memref.load %arg2[%c3_99] : memref<36xf32, #tpu.memory_space<smem>>
    %238 = vector.broadcast %237 : f32 to vector<1x256xf32>
    %239 = arith.mulf %236, %238 : vector<1x256xf32>
    %c0_100 = arith.constant 0 : index
    %c3_101 = arith.constant 3 : index
    %c112_102 = arith.constant 112 : index
    %240 = vector.load %arg6[%c0_100, %c3_101, %c112_102] : memref<1x4x512xf32, #tpu.memory_space<vmem>>, vector<1x1x256xf32>
    %241 = vector.shape_cast %240 : vector<1x1x256xf32> to vector<1x256xf32>
    %c7 = arith.constant 7 : index
    %242 = memref.load %arg2[%c7] : memref<36xf32, #tpu.memory_space<smem>>
    %243 = vector.broadcast %242 : f32 to vector<1x256xf32>
    %244 = arith.mulf %241, %243 : vector<1x256xf32>
    %245 = arith.addf %239, %244 : vector<1x256xf32>
    %c0_103 = arith.constant 0 : index
    %c3_104 = arith.constant 3 : index
    %c113_105 = arith.constant 113 : index
    %246 = vector.load %arg6[%c0_103, %c3_104, %c113_105] : memref<1x4x512xf32, #tpu.memory_space<vmem>>, vector<1x1x256xf32>
    %247 = vector.shape_cast %246 : vector<1x1x256xf32> to vector<1x256xf32>
    %248 = arith.mulf %247, %30 : vector<1x256xf32>
    %c11 = arith.constant 11 : index
    %249 = memref.load %arg2[%c11] : memref<36xf32, #tpu.memory_space<smem>>
    %250 = vector.broadcast %249 : f32 to vector<1x256xf32>
    %251 = arith.mulf %248, %250 : vector<1x256xf32>
    %252 = arith.addf %245, %251 : vector<1x256xf32>
    %c0_106 = arith.constant 0 : index
    %c3_107 = arith.constant 3 : index
    %c127_108 = arith.constant 127 : index
    %253 = vector.load %arg6[%c0_106, %c3_107, %c127_108] : memref<1x4x512xf32, #tpu.memory_space<vmem>>, vector<1x1x256xf32>
    %254 = vector.shape_cast %253 : vector<1x1x256xf32> to vector<1x256xf32>
    %255 = arith.mulf %254, %26 : vector<1x256xf32>
    %c15 = arith.constant 15 : index
    %256 = memref.load %arg2[%c15] : memref<36xf32, #tpu.memory_space<smem>>
    %257 = vector.broadcast %256 : f32 to vector<1x256xf32>
    %258 = arith.mulf %255, %257 : vector<1x256xf32>
    %259 = arith.addf %252, %258 : vector<1x256xf32>
    %c0_109 = arith.constant 0 : index
    %c3_110 = arith.constant 3 : index
    %c128_111 = arith.constant 128 : index
    %260 = vector.load %arg6[%c0_109, %c3_110, %c128_111] : memref<1x4x512xf32, #tpu.memory_space<vmem>>, vector<1x1x256xf32>
    %261 = vector.shape_cast %260 : vector<1x1x256xf32> to vector<1x256xf32>
    %c19 = arith.constant 19 : index
    %262 = memref.load %arg2[%c19] : memref<36xf32, #tpu.memory_space<smem>>
    %263 = vector.broadcast %262 : f32 to vector<1x256xf32>
    %264 = arith.mulf %261, %263 : vector<1x256xf32>
    %265 = arith.addf %259, %264 : vector<1x256xf32>
    %c0_112 = arith.constant 0 : index
    %c3_113 = arith.constant 3 : index
    %c129_114 = arith.constant 129 : index
    %266 = vector.load %arg6[%c0_112, %c3_113, %c129_114] : memref<1x4x512xf32, #tpu.memory_space<vmem>>, vector<1x1x256xf32>
    %267 = vector.shape_cast %266 : vector<1x1x256xf32> to vector<1x256xf32>
    %268 = arith.mulf %267, %30 : vector<1x256xf32>
    %c23 = arith.constant 23 : index
    %269 = memref.load %arg2[%c23] : memref<36xf32, #tpu.memory_space<smem>>
    %270 = vector.broadcast %269 : f32 to vector<1x256xf32>
    %271 = arith.mulf %268, %270 : vector<1x256xf32>
    %272 = arith.addf %265, %271 : vector<1x256xf32>
    %c0_115 = arith.constant 0 : index
    %c3_116 = arith.constant 3 : index
    %c143_117 = arith.constant 143 : index
    %273 = vector.load %arg6[%c0_115, %c3_116, %c143_117] : memref<1x4x512xf32, #tpu.memory_space<vmem>>, vector<1x1x256xf32>
    %274 = vector.shape_cast %273 : vector<1x1x256xf32> to vector<1x256xf32>
    %275 = arith.mulf %274, %26 : vector<1x256xf32>
    %c27 = arith.constant 27 : index
    %276 = memref.load %arg2[%c27] : memref<36xf32, #tpu.memory_space<smem>>
    %277 = vector.broadcast %276 : f32 to vector<1x256xf32>
    %278 = arith.mulf %275, %277 : vector<1x256xf32>
    %279 = arith.addf %272, %278 : vector<1x256xf32>
    %c0_118 = arith.constant 0 : index
    %c3_119 = arith.constant 3 : index
    %c144_120 = arith.constant 144 : index
    %280 = vector.load %arg6[%c0_118, %c3_119, %c144_120] : memref<1x4x512xf32, #tpu.memory_space<vmem>>, vector<1x1x256xf32>
    %281 = vector.shape_cast %280 : vector<1x1x256xf32> to vector<1x256xf32>
    %c31 = arith.constant 31 : index
    %282 = memref.load %arg2[%c31] : memref<36xf32, #tpu.memory_space<smem>>
    %283 = vector.broadcast %282 : f32 to vector<1x256xf32>
    %284 = arith.mulf %281, %283 : vector<1x256xf32>
    %285 = arith.addf %279, %284 : vector<1x256xf32>
    %c0_121 = arith.constant 0 : index
    %c3_122 = arith.constant 3 : index
    %c145_123 = arith.constant 145 : index
    %286 = vector.load %arg6[%c0_121, %c3_122, %c145_123] : memref<1x4x512xf32, #tpu.memory_space<vmem>>, vector<1x1x256xf32>
    %287 = vector.shape_cast %286 : vector<1x1x256xf32> to vector<1x256xf32>
    %288 = arith.mulf %287, %30 : vector<1x256xf32>
    %c35 = arith.constant 35 : index
    %289 = memref.load %arg2[%c35] : memref<36xf32, #tpu.memory_space<smem>>
    %290 = vector.broadcast %289 : f32 to vector<1x256xf32>
    %291 = arith.mulf %288, %290 : vector<1x256xf32>
    %292 = arith.addf %285, %291 : vector<1x256xf32>
    %c3_124 = arith.constant 3 : index
    %293 = memref.load %arg3[%c3_124] : memref<4xf32, #tpu.memory_space<smem>>
    %294 = vector.broadcast %293 : f32 to vector<1x256xf32>
    %295 = arith.addf %292, %294 : vector<1x256xf32>
    %cst_125 = arith.constant 0.000000e+00 : f32
    %296 = vector.broadcast %cst_125 : f32 to vector<1x256xf32>
    %297 = arith.maximumf %295, %296 : vector<1x256xf32>
    %c3_126 = arith.constant 3 : index
    %298 = memref.load %arg4[%c3_126] : memref<4xf32, #tpu.memory_space<smem>>
    %299 = vector.broadcast %298 : f32 to vector<1x256xf32>
    %300 = arith.mulf %297, %299 : vector<1x256xf32>
    %301 = arith.addf %233, %300 : vector<1x256xf32>
    %302 = arith.negf %301 : vector<1x256xf32>
    %303 = math.exp %302 : vector<1x256xf32>
    %cst_127 = arith.constant 1.000000e+00 : f32
    %304 = vector.broadcast %cst_127 : f32 to vector<1x256xf32>
    %305 = arith.addf %304, %303 : vector<1x256xf32>
    %306 = arith.divf %304, %305 : vector<1x256xf32>
    %c0_128 = arith.constant 0 : index
    %c0_129 = arith.constant 0 : index
    %c0_130 = arith.constant 0 : index
    %307 = vector.load %arg1[%c0_128, %c0_129, %c0_130] : memref<1x4x256xf32, #tpu.memory_space<vmem>>, vector<1x1x256xf32>
    %308 = vector.shape_cast %307 : vector<1x1x256xf32> to vector<1x256xf32>
    %309 = arith.mulf %308, %306 : vector<1x256xf32>
    %c0_131 = arith.constant 0 : index
    %c0_132 = arith.constant 0 : index
    %c0_133 = arith.constant 0 : index
    %310 = vector.load %arg5[%c0_131, %c0_132, %c0_133] : memref<1x4x256xf32, #tpu.memory_space<vmem>>, vector<1x1x256xf32>
    %311 = vector.shape_cast %310 : vector<1x1x256xf32> to vector<1x256xf32>
    %312 = vector.shape_cast %309 : vector<1x256xf32> to vector<1x1x256xf32>
    tpu.vector_store %arg5[%c0_131, %c0_132, %c0_133], %312 {strides = array<i32>} : memref<1x4x256xf32, #tpu.memory_space<vmem>>, vector<1x1x256xf32>,
    %c0_134 = arith.constant 0 : index
    %c1_135 = arith.constant 1 : index
    %c0_136 = arith.constant 0 : index
    %313 = vector.load %arg1[%c0_134, %c1_135, %c0_136] : memref<1x4x256xf32, #tpu.memory_space<vmem>>, vector<1x1x256xf32>
    %314 = vector.shape_cast %313 : vector<1x1x256xf32> to vector<1x256xf32>
    %315 = arith.mulf %314, %306 : vector<1x256xf32>
    %c0_137 = arith.constant 0 : index
    %c1_138 = arith.constant 1 : index
    %c0_139 = arith.constant 0 : index
    %316 = vector.load %arg5[%c0_137, %c1_138, %c0_139] : memref<1x4x256xf32, #tpu.memory_space<vmem>>, vector<1x1x256xf32>
    %317 = vector.shape_cast %316 : vector<1x1x256xf32> to vector<1x256xf32>
    %318 = vector.shape_cast %315 : vector<1x256xf32> to vector<1x1x256xf32>
    tpu.vector_store %arg5[%c0_137, %c1_138, %c0_139], %318 {strides = array<i32>} : memref<1x4x256xf32, #tpu.memory_space<vmem>>, vector<1x1x256xf32>,
    %c0_140 = arith.constant 0 : index
    %c2_141 = arith.constant 2 : index
    %c0_142 = arith.constant 0 : index
    %319 = vector.load %arg1[%c0_140, %c2_141, %c0_142] : memref<1x4x256xf32, #tpu.memory_space<vmem>>, vector<1x1x256xf32>
    %320 = vector.shape_cast %319 : vector<1x1x256xf32> to vector<1x256xf32>
    %321 = arith.mulf %320, %306 : vector<1x256xf32>
    %c0_143 = arith.constant 0 : index
    %c2_144 = arith.constant 2 : index
    %c0_145 = arith.constant 0 : index
    %322 = vector.load %arg5[%c0_143, %c2_144, %c0_145] : memref<1x4x256xf32, #tpu.memory_space<vmem>>, vector<1x1x256xf32>
    %323 = vector.shape_cast %322 : vector<1x1x256xf32> to vector<1x256xf32>
    %324 = vector.shape_cast %321 : vector<1x256xf32> to vector<1x1x256xf32>
    tpu.vector_store %arg5[%c0_143, %c2_144, %c0_145], %324 {strides = array<i32>} : memref<1x4x256xf32, #tpu.memory_space<vmem>>, vector<1x1x256xf32>,
    %c0_146 = arith.constant 0 : index
    %c3_147 = arith.constant 3 : index
    %c0_148 = arith.constant 0 : index
    %325 = vector.load %arg1[%c0_146, %c3_147, %c0_148] : memref<1x4x256xf32, #tpu.memory_space<vmem>>, vector<1x1x256xf32>
    %326 = vector.shape_cast %325 : vector<1x1x256xf32> to vector<1x256xf32>
    %327 = arith.mulf %326, %306 : vector<1x256xf32>
    %c0_149 = arith.constant 0 : index
    %c3_150 = arith.constant 3 : index
    %c0_151 = arith.constant 0 : index
    %328 = vector.load %arg5[%c0_149, %c3_150, %c0_151] : memref<1x4x256xf32, #tpu.memory_space<vmem>>, vector<1x1x256xf32>
    %329 = vector.shape_cast %328 : vector<1x1x256xf32> to vector<1x256xf32>
    %330 = vector.shape_cast %327 : vector<1x256xf32> to vector<1x1x256xf32>
    tpu.vector_store %arg5[%c0_149, %c3_150, %c0_151], %330 {strides = array<i32>} : memref<1x4x256xf32, #tpu.memory_space<vmem>>, vector<1x1x256xf32>,
    return
  }
  func.func @transform_0(%arg0: i32) -> (i32, i32, i32) {
    %c0_i32 = arith.constant 0 : i32
    %c0_i32_0 = arith.constant 0 : i32
    %c0_i32_1 = arith.constant 0 : i32
    return %arg0, %c0_i32, %c0_i32_0 : i32, i32, i32
  }
  func.func @transform_1(%arg0: i32) -> i32 {
    %c0_i32 = arith.constant 0 : i32
    %c0_i32_0 = arith.constant 0 : i32
    return %c0_i32 : i32
  }
  func.func @transform_2(%arg0: i32) -> i32 {
    %c0_i32 = arith.constant 0 : i32
    %c0_i32_0 = arith.constant 0 : i32
    return %c0_i32 : i32
  }
  func.func @transform_3(%arg0: i32) -> i32 {
    %c0_i32 = arith.constant 0 : i32
    %c0_i32_0 = arith.constant 0 : i32
    return %c0_i32 : i32
  }
  func.func @transform_4(%arg0: i32) -> (i32, i32, i32) {
    %c0_i32 = arith.constant 0 : i32
    %c0_i32_0 = arith.constant 0 : i32
    %c0_i32_1 = arith.constant 0 : i32
    return %arg0, %c0_i32, %c0_i32_0 : i32, i32, i32
  }
}

</mosaic_0001>

<bundles_post_ra>
// kernel: tpu_custom_call.1
= control target key start
LH: loop header
LB: loop body
LE: loop exit
PB: predicated region body
PF: predicated region fallthrough
CT: control target
= control target key end

     0   :  { %9 = vsyncpa [#allocation4], 0  ;;  %s1729_s0 = inlined_call_operand.hbm [shape: f32[2,4,256], index: 0, kind: input, shape index: {}]   ;;  %s1730_s1 = inlined_call_operand.vmem [shape: f32[36], index: 1, kind: input, shape index: {}]   ;;  %s1731_s2 = inlined_call_operand.vmem [shape: f32[4], index: 2, kind: input, shape index: {}]   ;;  %s1732_s3 = inlined_call_operand.vmem [shape: f32[4], index: 3, kind: input, shape index: {}]   ;;  %s1733_s4 = inlined_call_operand.hbm [shape: f32[2,4,256], index: 4, kind: output, shape index: {}]  }
   0x1   :  { %11 = vsyncpa [#allocation4 + $0x1], 0 }
   0x2   :  { %12 = vsyncpa [#allocation6], 0 }
   0x3   :  { %13 = vsyncpa [#allocation9], 0 }
   0x4   :  { %14 = vsyncpa [#allocation5], 0 }
   0x5   :  { %16 = vsyncpa [#allocation5 + $0x1], 0  ;;  %s1312_s15 = smov 0   ;;  %s1314_s16 = smov 0  }
   0x6   :  { %s1316_s17 = smov 0   ;;  %s1318_s18 = smov 0  }
   0x7 LB: > { %s1333_s19 = sadd.s32 4294967295, %s1266_s18   ;;  %s948_s20 = sadd.s32 4294967294, %s1266_s18   ;;  %s1266_s18 = sphi %s1318_s18, %s1755_s18   ;;  %s1262_s17 = sphi %s1316_s17, %s1754_s17   ;;  %s1258_s16 = sphi %s1314_s16, %s1753_s16   ;;  %s1254_s15 = sphi %s1312_s15, %s1752_s15  }
   0x8   : > { %p42_p0 = scmp.ne.s32.totalorder %s1258_s16, %s1254_s15  ;;  %p1734_p1 = scmp.eq.s32.totalorder %s1333_s19, 0 }
   0x9   : > { %p135_p3 = scmp.eq.s32.totalorder %s948_s20, 1  ;;  %p949_p5 = scmp.ge.s32.totalorder %s1266_s18, 1 }
   0xa   : > { %p1342_p4 = por %p1734_p1, %p42_p0  ;;  %p142_p7 = scmp.lt.s32.totalorder %s1266_s18, 3 }
   0xb   : > { %p1347_p6 = por %p135_p3, %p42_p0  ;;  %s166_s25 = sshll.u32 %s1731_s2, 4  ;;  %s167_s25 = int_to_ptr.vmem [resolvable:$true] %s166_s25 }
   0xc   : > { %s1737_s21 = scalar_select %p1342_p4, 1, 0 }
   0xd   : > { %s1738_s22 = scalar_select %p1347_p6, 1, 0 }
   0xe   : > { %p1355_p8 = pnand %p949_p5, %p142_p7  ;;  %s155_s29 = sshll.u32 %s1730_s1, 4  ;;  %s156_s29 = int_to_ptr.vmem [resolvable:$true] %s155_s29 }
   0xf   : > { %s177_s7 = sshll.u32 %s1732_s3, 4  ;;  %s1117_s8 = scalar_lea.vmem %s167_s25, 16  ;;  %s1374_s7 = int_to_ptr.vmem [resolvable:$true] %s177_s7 }
  0x10   : > { %s1739_s26 = scalar_select %p1355_p8, 1, 0 }
  0x11   : > { %p1038_p10 = pneg %p1355_p8  ;;  %p1118_p12 = scmp.ne.s32.totalorder %s167_s25, %s1117_s8 }
  0x12   : > { %p1125_p5 = scmp.lt.s32.totalorder %s167_s25, %s167_s25  ;;  %p1126_p7 = scmp.lt.s32.totalorder %s1117_s8, %s1117_s8 }
  0x13   : > { %p1367_p11 = pnand %p1038_p10, %p1734_p1 }
  0x14   : > { %p1127_p10 = por %p1126_p7, %p1125_p5 }
  0x15   : > { %p1119_p13 = pneg %p1367_p11 }
  0x17   : > { %p1120_p0 = pnand %p1119_p13, %p1118_p12 }
  0x19   : > { %p1121_p3 = pneg %p1120_p0 }
  0x1b   : > { %p1128_p9 = pnand %p1127_p10, %p1121_p3 }
  0x1d   : > { %1131 = shalt.err (!%p1128_p9)
}
  0x1e   : > { %s1268_s9 = smov [#allocation8]   ;;  %s1132_s10 = scalar_lea.vmem %s156_s29, 16 }
  0x1f   : > { %1044 = dma.vmem_to_smem (!%p1367_p11), %s167_s25, 16, %s1268_s9, [#allocation9]  }
  0x20   : > { %p1133_p1 = scmp.ne.s32.totalorder %s156_s29, %s1132_s10  ;;  %p1140_p4 = scmp.lt.s32.totalorder %s156_s29, %s156_s29 }
  0x21   : > { %p1141_p8 = scmp.lt.s32.totalorder %s1132_s10, %s1132_s10 }
  0x22   : > { %p1135_p2 = pnand %p1133_p1, %p1119_p13 }
  0x23   : > { %p1142_p12 = por %p1141_p8, %p1140_p4 }
  0x24   : > { %p1136_p6 = pneg %p1135_p2 }
  0x26   : > { %p1143_p0 = pnand %p1142_p12, %p1136_p6 }
  0x28   : > { %1146 = shalt.err (!%p1143_p0)
}
  0x29   : > { %s1269_s11 = smov [#allocation7]   ;;  %s1147_s12 = scalar_lea.vmem %s1374_s7, 16 }
  0x2a   : > { %1041 = dma.vmem_to_smem (!%p1367_p11), %s156_s29, 16, %s1269_s11, [#allocation6]  }
  0x2b   : > { %p1148_p9 = scmp.ne.s32.totalorder %s1374_s7, %s1147_s12  ;;  %p1155_p2 = scmp.lt.s32.totalorder %s1374_s7, %s1374_s7 }
  0x2c   : > { %p1156_p5 = scmp.lt.s32.totalorder %s1147_s12, %s1147_s12 }
  0x2d   : > { %p1150_p3 = pnand %p1148_p9, %p1119_p13 }
  0x2e   : > { %p1157_p4 = por %p1156_p5, %p1155_p2 }
  0x2f   : > { %p1151_p1 = pneg %p1150_p3 }
  0x31   : > { %p1158_p6 = pnand %p1157_p4, %p1151_p1 }
  0x33   : > { %1161 = shalt.err (!%p1158_p6)
}
  0x34   : > { %s1270_s13 = smov [#allocation10]   ;;  %s1399_s14 = sadd.s32 1, %s1266_s18  }
  0x35   : > { %1047 = dma.vmem_to_smem (!%p1367_p11), %s1374_s7, 16, %s1270_s13, [#allocation9]  }
  0x36   : > { %s26_s20 = ssub.s32 %s1266_s18, %s1399_s14  ;;  %s29_s23 = sadd.s32 1, %s1262_s17 }
  0x37   : > { %p27_p8 = scmp.eq.s32.totalorder %s26_s20, 0  ;;  %p36_p13 = scmp.ne.s32.totalorder %s1262_s17, %s1258_s16 }
  0x38   : > { %p37_p7 = scmp.eq.s32.totalorder %s1266_s18, 0  ;;  %p1059_p10 = scmp.lt.s32.totalorder %s1266_s18, 2 }
  0x39   : > { %s1409_s24 = scalar_select %p27_p8, %s1262_s17, %s29_s23  }
  0x3a   : > { %p38_p12 = por %p37_p7, %p36_p13  ;;  %p1741_p0 = scmp.eq.s32.totalorder %s1333_s19, 1 }
  0x3b   : > { %s188_s27 = sand.u32 1, %s1262_s17   ;;  %s1020_s28 = sshll.u32 %s1266_s18, 7 }
  0x3c   : > { %p1413_p9 = por %p1741_p0, %p36_p13  ;;  %s954_s29 = sshll.u32 %s188_s27, 3 }
  0x3d   : > { %s1422_s6 = scalar_lea.hbm %s1729_s0, %s1020_s28  ;;  %s192_s7 = scalar_lea.vmem [#allocation3], %s954_s29 }
  0x3e   : > { %s200_s8 = sshll.u32 %s192_s7, 4  ;;  %p1424_p11 = pnand %p1059_p10, %p38_p12  ;;  %s1428_s8 = int_to_ptr.vmem [resolvable:$true] %s200_s8 }
  0x3f   : > { %s189_s10 = scalar_lea.sflag [#allocation4], %s188_s27  ;;  %s1162_s11 = scalar_lea.hbm %s1422_s6, 128 }
  0x40   : > { %p1163_p3 = scmp.ne.s32.totalorder %s1422_s6, %s1162_s11  ;;  %p1164_p1 = pneg %p1424_p11 }
  0x41   : > { %s1167_s20 = scalar_lea.hbm %s1729_s0, 256  ;;  %p1168_p4 = scmp.lt.u32.totalorder %s1422_s6, %s1729_s0 }
  0x42   : > { %p1165_p2 = pnand %p1164_p1, %p1163_p3  ;;  %p1169_p6 = scmp.lt.u32.totalorder %s1167_s20, %s1162_s11 }
  0x43   : > { %p1171_p13 = scmp.lt.u32.totalorder %s1162_s11, %s1422_s6 }
  0x44   : > { %p1166_p5 = pneg %p1165_p2  ;;  %p1170_p8 = por %p1169_p6, %p1168_p4 }
  0x46   : > { %p1172_p7 = por %p1171_p13, %p1170_p8 }
  0x48   : > { %p1173_p10 = pnand %p1172_p7, %p1166_p5 }
  0x4a   : > { %1176 = shalt.err (!%p1173_p10)
}
  0x4b   : > { %s1177_s27 = scalar_lea.vmem %s1428_s8, 128  ;;  %s1271_s29 = smov [#allocation3]  }
  0x4c   : > { %p1178_p12 = scmp.ne.s32.totalorder %s1428_s8, %s1177_s27  ;;  %s1182_s30 = sshll.u32 %s1271_s29, 4  ;;  %s1183_s30 = int_to_ptr.vmem [resolvable:$false] %s1182_s30 }
  0x4d   : > { %s1184_s5 = scalar_lea.vmem %s1183_s30, 256  ;;  %p1185_p2 = scmp.lt.s32.totalorder %s1428_s8, %s1183_s30 }
  0x4e   : > { %p1180_p0 = pnand %p1178_p12, %p1164_p1  ;;  %p1186_p4 = scmp.lt.s32.totalorder %s1184_s5, %s1177_s27 }
  0x50   : > { %p1181_p3 = pneg %p1180_p0  ;;  %p1187_p6 = por %p1186_p4, %p1185_p2 }
  0x52   : > { %p1188_p8 = pnand %p1187_p6, %p1181_p3 }
  0x54   : > { %1191 = shalt.err (!%p1188_p8)
}
  0x55   : > { %1051 = dma.hbm_to_vmem [thread:$0]  (!%p1424_p11), %s1422_s6, 128, %s1428_s8, %s189_s10  }
  0x56   : > { %p1744_p5 = scmp.ne.s32.totalorder %s1739_s26, 0 }
  0x57   : > { %s1458_s7 = sand.u32 (!%p1744_p5), 1, %s1258_s16   ;;  %p1745_p1 = scmp.ne.s32.totalorder (!%p1744_p5), %s1737_s21, 0 }
  0x58   : > { %209 = sbr.rel (%p1744_p5) target bundleno = 572 (0x23c), region = 36  ;;  %s958_s11 = sshll.u32 (!%p1744_p5), %s1458_s7, 3 }
  0x59   : > { %s212_s12 = scalar_lea.sflag (!%p1744_p5), [#allocation4], %s1458_s7  ;;  %s1464_s13 = scalar_lea.vmem (!%p1744_p5), [#allocation3], %s958_s11 }
  0x5f   : > { %1237 = dma.done.wait (%p1745_p1), %s212_s12, 128  }
  0x60   : > { %1239 = vsyncadd (%p1745_p1), %s212_s12, 4294967168  ;;  %p1746_p11 = scmp.eq.s32.totalorder %s1333_s19, 0 }
  0x62   : > { %1241 = dma.done.wait (%p1746_p11), [#allocation6], 16   ;;  %p1747_p13 = pmov %p1746_p11 }
  0x63   : > { %p1748_p7 = pmov %p1746_p11 }
  0x64   : > { %1243 = vsyncadd (%p1747_p13), [#allocation6], 4294967280 }
  0x65   : > { %1245 = dma.done.wait (%p1748_p7), [#allocation9], 32   ;;  %p1749_p10 = pmov %p1748_p7 }
  0x67   : > { %1247 = vsyncadd (%p1749_p10), [#allocation9], 4294967264 }
  0x68   : > { %232 = sfence }
  0x69   : > { %v257_v0 = vlaneseq  ;;  %v255_v1 = vld [vmem:[%s1464_s13] sm:$0xff]  ;;  %v1272_v2 = vmov 1966171168   ;;  %v1273_v4 = vmov 0.0   ;;  %s976_s21 = sld [smem:[#allocation7 + $0x5]]  ;;  %s970_s26 = sld [smem:[#allocation7 + $0x10]] }
  0x6a   : > { %v301_v3 = vunpack.c.l.s4 %v1272_v2  ;;  %253 = vst [vmem:[#allocation2] sm:$0xf] %v1273_v4  ;;  %254 = vst [vmem:[#allocation2 + $0xc] sm:$0xf] %v1273_v4  ;;  %s967_s6 = sld [smem:[#allocation7 + $0x4]]  ;;  %s1274_s8 = smov 113  }
  0x6b   : > { %256 = vst [vmem:[#allocation2 + $0x4] sm:$0xff] %v255_v1  ;;  %v258_v5 = vand.u32 127, %v257_v0  ;;  %v304_v9 = vshrl.u32 %v257_v0, 7  ;;  %s1275_s9 = smov 1   ;;  %s987_s10 = sld [smem:[#allocation7 + $0x6]]  ;;  %vm356_vm4 = vcmask 924672  }
  0x6c   : > { %v302_v8 = vunpack.c.0.s8 %v301_v3  ;;  %s1276_s20 = smov 127   ;;  %s1277_s23 = smov 15   ;;  %vm332_vm5 = vcmask 1039360   ;;  %vm406_vm6 = vcmask 7168   ;;  %vm425_vm7 = vcmask 121856  }
  0x6d   : > { %v259_v6 = vadd.s32 128, %v258_v5  ;;  %v264_v7 = vand.u32 15, %v258_v5  ;;  %s998_s28 = sld [smem:[#allocation7 + $0x7]]  ;;  %s990_s27 = sld [smem:[#allocation7 + $0x12]]  ;;  %vm455_vm8 = vcmask 138240   ;;  %vm317_vm9 = vcmask 908288  }
  0x6e   : > { %v305_v13 = vsub.s32 %v302_v8, %v304_v9  ;;  %s1278_s29 = smov 17   ;;  %s979_s30 = sld [smem:[#allocation7 + $0x11]]  ;;  %vm367_vm10 = vcmask 1031168   ;;  %vm385_vm11 = vcmask 916480   ;;  %vm417_vm12 = vcmask 900096  }
  0x6f   : > { %v271_v10 = vand.u32 15, %v259_v6  ;;  %vm290_vm0 = vcmp.ne.s32.totalorder %v264_v7, 15  ;;  %vm284_vm1 = vcmp.ne.s32.totalorder %v264_v7, 0  ;;  %v485_v23 = vstv %s976_s21  ;;  %s973_s5 = sld [smem:[#allocation7 + $0x1c]]  ;;  %s1279_s12 = smov 111  }
  0x70   : > { %v965_v11 = vsel %vm290_vm0, 1.0, %v1273_v4  ;;  %v963_v12 = vsel %vm284_vm1, 1.0, %v1273_v4  ;;  %v392_v26 = vstv %s970_s26  ;;  %v326_v28 = vstv %s967_s6  ;;  %s1001_s21 = sld [smem:[#allocation7 + $0x13]]  ;;  %s993_s26 = sld [smem:[#allocation7 + $0x1e]] }
  0x71   : > { %vm291_vm2 = vcmp.ne.s32.totalorder %v271_v10, 15  ;;  %vm285_vm3 = vcmp.ne.s32.totalorder %v271_v10, 0  ;;  %v592_v32 = vstv %s987_s10  ;;  %s982_s6 = sld [smem:[#allocation7 + $0x1d]]  ;;  %s968_s10 = sld [smem:[#allocation7 + $0x8]]  ;;  %vm436_vm13 = vcmask 785408  }
  0x72   : > { %v966_v14 = vsel %vm291_vm2, 1.0, %v1273_v4  ;;  %v964_v15 = vsel %vm285_vm3, 1.0, %v1273_v4  ;;  %v1481_v22 = vld [vmem:[#allocation2 + $0x1] ss:$4 sm:$0x7]  ;;  %vm448_vm14 = vcmask 777216  }
  0x73   : > { %v338_v16 = vcombine.low %v965_v11, %v966_v14  ;;  %v299_v17 = vcombine.low %v963_v12, %v964_v15  ;;  %v486_v24 = vmul.f32 %v485_v23, %v1481_v22  ;;  %v390_v25 = vld [vmem:[#allocation2 + $0x4] ss:$4 sm:$0x3]  ;;  %v1487_v31 = vld [vmem:[#allocation2 + $0x2] ss:$4 sm:$0x7]  ;;  %v699_v35 = vstv %s998_s28 }
  0x74   : > { %v324_v27 = vld [vmem:[#allocation2] ss:$4 sm:$0x7]  ;;  %v393_v29 = vmul.f32 %v392_v26, %v390_v25  ;;  %v593_v33 = vmul.f32 %v592_v32, %v1487_v31  ;;  %v1492_v34 = vld [vmem:[#allocation2 + $0x3] ss:$4 sm:$0x7]  ;;  %v627_v37 = vstv %s990_s27  ;;  %v520_v41 = vstv %s979_s30 }
  0x75   : > { %v345_v18 = vrot.slane %v338_v16, %v305_v13  ;;  %v306_v19 = vrot.slane %v299_v17, %v305_v13  ;;  %v327_v30 = vmul.f32 %v326_v28, %v324_v27  ;;  %v625_v36 = vld [vmem:[#allocation2 + $0x6] ss:$4 sm:$0x3]  ;;  %v700_v38 = vmul.f32 %v699_v35, %v1492_v34  ;;  %v518_v40 = vld [vmem:[#allocation2 + $0x5] ss:$4 sm:$0x3] }
  0x76   : > { %v628_v39 = vmul.f32 %v627_v37, %v625_v36  ;;  %v1497_v42 = vld [vmem:[#allocation2 + $0x4] ss:$4 sm:$0x7]  ;;  %v442_v43 = vstv %s973_s5  ;;  %v521_v44 = vmul.f32 %v520_v41, %v518_v40  ;;  %v732_v46 = vld [vmem:[#allocation2 + $0x7] ss:$4 sm:$0x3]  ;;  %v734_v47 = vstv %s1001_s21 }
  0x77   : > { %v352_v20 = vrot.slane %v345_v18, %v305_v13  ;;  %v313_v21 = vrot.slane %v306_v19, %v305_v13  ;;  %v443_v45 = vmul.f32 %v442_v43, %v1497_v42  ;;  %v1502_v48 = vld [vmem:[#allocation2 + $0x6] ss:$4 sm:$0x7]  ;;  %v663_v49 = vstv %s993_s26  ;;  %v1507_v52 = vld [vmem:[#allocation2 + $0x5] ss:$4 sm:$0x7] }
  0x78   : > { %v735_v50 = vmul.f32 %v734_v47, %v732_v46  ;;  %v664_v51 = vmul.f32 %v663_v49, %v1502_v48  ;;  %v556_v53 = vstv %s982_s6  ;;  %v361_v59 = vstv %s968_s10  ;;  %s1517_s28 = sld [smem:[#allocation7 + $0xa]]  ;;  %v371_v1 = vld [vmem:[#allocation2] ss:$4 sm:$0x7]  ;;  %s1520_s27 = sld [smem:[#allocation7 + $0xb]] }
  0x79   : > { %353 = vrot.lane.b32.xlu0 %v352_v20, %s1274_s8  ;;  %403 = vrot.lane.b32.xlu1 %v352_v20, %s1275_s9  ;;  %s1280_s8 = smov 95   ;;  %v557_v54 = vmul.f32 %v556_v53, %v1507_v52  ;;  %s977_s9 = sld [smem:[#allocation7 + $0x9]]  ;;  %v505_v3 = vld [vmem:[#allocation2 + $0x1] ss:$4 sm:$0x7]  ;;  %vm466_vm15 = vcmask 769024  }
  0x7a   : > { %s1522_s30 = sld [smem:[#allocation7 + $0x15]]  ;;  %s1527_s5 = sld [smem:[#allocation7 + $0xe]]  ;;  %v530_v14 = vld [vmem:[#allocation2 + $0x5] ss:$4 sm:$0x7]  ;;  %vm814_vm0 = vcmp.lt.s32.totalorder %v257_v0, 256 }
  0x7b   : > { %v612_v18 = vld [vmem:[#allocation2 + $0x2] ss:$4 sm:$0x7]  ;;  %s1534_s21 = sld [smem:[#allocation7 + $0x14]]  ;;  %s1282_s26 = smov 112  }
  0x7c   : > { %s1538_s6 = sld [smem:[#allocation7 + $0xf]]  ;;  %v402_v26 = vld [vmem:[#allocation2 + $0x4] ss:$4 sm:$0x7]  ;;  %s1546_s10 = sld [smem:[#allocation7 + $0x19]] }
  0x7d   : > { %372 = vrot.lane.b32.xlu0 %v313_v21, %s1276_s20  ;;  %422 = vrot.lane.b32.xlu1 %v313_v21, %s1277_s23  ;;  %s1515_s23 = sld [smem:[#allocation7 + $0xd]]  ;;  %v421_v35 = vld [vmem:[#allocation2 + $0x4] ss:$4 sm:$0x7] }
  0x7e   : > { %v603_v19 = vstv %s1517_s28  ;;  %s1283_s28 = smov 110  }
  0x7f   : > { %v496_v58 = vstv %s977_s9  ;;  %s1543_s9 = sld [smem:[#allocation7 + $0x18]] }
  0x80   : > { %v533_v25 = vstv %s1522_s30  ;;  %s1560_s30 = sld [smem:[#allocation7 + $0x1a]] }
  0x81   : > { %452 = vrot.lane.b32.xlu0 %v352_v20, %s1278_s29  ;;  %488 = vrot.lane.b32.xlu1 %v486_v24, %s1276_s20  ;;  %v710_v20 = vstv %s1520_s27  ;;  %v411_v37 = vstv %s1534_s21  ;;  %s1557_s27 = sld [smem:[#allocation7 + $0x21]]  ;;  %s1003_s21 = sld [smem:[#allocation7 + $0x1b]] }
  0x82   : > { %v722_v40 = vstv %s1538_s6  ;;  %s994_s6 = sld [smem:[#allocation7 + $0x22]] }
  0x83   : > { %v508_v9 = vstv %s1515_s23  ;;  %s1554_s23 = sld [smem:[#allocation7 + $0x17]] }
  0x85   : > { %395 = vrot.lane.b32.xlu1 %v393_v29, %s1279_s12  ;;  %329 = vrot.lane.b32.xlu0 %v327_v30, %s1276_s20  ;;  %v615_v29 = vstv %s1527_s5  ;;  %v719_v30 = vld [vmem:[#allocation2 + $0x3] ss:$4 sm:$0x7]  ;;  %v430_v49 = vstv %s1543_s9  ;;  %s974_s5 = sld [smem:[#allocation7 + $0x20]]  ;;  %s1005_s9 = sld [smem:[#allocation7 + $0x23]] }
  0x89   : > { %314 = vrot.lane.b32.xlu1 %v313_v21, %s1279_s12  ;;  %595 = vrot.lane.b32.xlu0 %v593_v33, %s1276_s20 }
  0x8d   : > { %702 = vrot.lane.b32.xlu0 %v700_v38, %s1276_s20  ;;  %630 = vrot.lane.b32.xlu1 %v628_v39, %s1279_s12  ;;  %s1513_s20 = sld [smem:[#allocation7 + $0xc]]  ;;  %v542_v39 = vld [vmem:[#allocation2 + $0x5] ss:$4 sm:$0x7] }
  0x91   : > { %523 = vrot.lane.b32.xlu0 %v521_v44, %s1279_s12  ;;  %445 = vrot.lane.b32.xlu1 %v443_v45, %s1280_s8  ;;  %v637_v45 = vld [vmem:[#allocation2 + $0x6] ss:$4 sm:$0x7] }
  0x93   : > { %v379_v8 = vstv %s1513_s20  ;;  %s1550_s20 = sld [smem:[#allocation7 + $0x16]] }
  0x95   : > { %737 = vrot.lane.b32.xlu0 %v735_v50, %s1279_s12  ;;  %666 = vrot.lane.b32.xlu1 %v664_v51, %s1280_s8  ;;  %s1281_s12 = smov 126   ;;  %v744_v50 = vld [vmem:[#allocation2 + $0x7] ss:$4 sm:$0x7]  ;;  %v545_v51 = vstv %s1546_s10  ;;  %s1285_s10 = smov 94  }
  0x99   : > { %559 = vrot.lane.b32.xlu0 %v557_v54, %s1280_s8 }
  0xeb   : > { %v354_v55 = vpop.permute.xlu0 %353  ;;  %v404_v60 = vpop.permute.xlu1 %403 }
  0xec   : > { %v355_v56 = vrot.slane %v354_v55, 7  ;;  %v405_v6 = vrot.slane %v404_v60, 7 }
  0xee   : > { %v357_v57 = vsel %vm356_vm4, %v355_v56, %v354_v55  ;;  %v407_v13 = vsel %vm406_vm6, %v405_v6, %v404_v60  ;;  %v747_v60 = vstv %s1554_s23  ;;  %s1595_s23 = sld [smem:[#allocation7 + $0x2]] }
  0xef   : > { %v359_v61 = vmul.f32 %v357_v57, %v324_v27  ;;  %v494_v62 = vmul.f32 %v1481_v22, %v357_v57  ;;  %v373_v63 = vpop.permute.xlu0 %372  ;;  %v601_v12 = vmul.f32 %v1487_v31, %v357_v57  ;;  %v708_v17 = vmul.f32 %v1492_v34, %v357_v57  ;;  %v423_v21 = vpop.permute.xlu1 %422  ;;  %v649_v57 = vld [vmem:[#allocation2 + $0x6] ss:$4 sm:$0x7] }
  0xf0   : > { %v374_v2 = vrot.slane %v373_v63, 7  ;;  %v531_v22 = vmul.f32 %v530_v14, %v407_v13  ;;  %v424_v28 = vrot.slane %v423_v21, 7  ;;  %v409_v32 = vmul.f32 %v407_v13, %v402_v26 }
  0xf1   : > { %v497_v4 = vmul.f32 %v496_v58, %v494_v62  ;;  %v362_v5 = vmul.f32 %v361_v59, %v359_v61  ;;  %v604_v24 = vmul.f32 %v603_v19, %v601_v12  ;;  %v711_v27 = vmul.f32 %v710_v20, %v708_v17 }
  0xf2   : > { %v375_v7 = vsel %vm332_vm5, %v374_v2, %v373_v63  ;;  %v534_v31 = vmul.f32 %v533_v25, %v531_v22  ;;  %v426_v36 = vsel %vm425_vm7, %v424_v28, %v423_v21  ;;  %v412_v43 = vmul.f32 %v411_v37, %v409_v32 }
  0xf3   : > { %v377_v10 = vmul.f32 %v375_v7, %v371_v1  ;;  %v506_v11 = vmul.f32 %v505_v3, %v375_v7  ;;  %499 = vrot.lane.b32.xlu1 %v497_v4, %s1281_s12  ;;  %364 = vrot.lane.b32.xlu0 %v362_v5, %s1281_s12  ;;  %v613_v23 = vmul.f32 %v612_v18, %v375_v7  ;;  %v453_v38 = vpop.permute.xlu0 %452  ;;  %v640_v59 = vstv %s1550_s20  ;;  %v756_v4 = vld [vmem:[#allocation2 + $0x7] ss:$4 sm:$0x7]  ;;  %v489_v21 = vpop.permute.xlu1 %488  ;;  %s321_s20 = sld [smem:[#allocation7]] }
  0xf4   : > { %v720_v34 = vmul.f32 %v719_v30, %v375_v7  ;;  %v428_v41 = vmul.f32 %v426_v36, %v421_v35  ;;  %v454_v44 = vrot.slane %v453_v38, 7  ;;  %v543_v46 = vmul.f32 %v542_v39, %v426_v36 }
  0xf5   : > { %v380_v15 = vmul.f32 %v379_v8, %v377_v10  ;;  %v509_v16 = vmul.f32 %v508_v9, %v506_v11  ;;  %v616_v33 = vmul.f32 %v615_v29, %v613_v23  ;;  %v638_v53 = vmul.f32 %v637_v45, %v407_v13 }
  0xf6   : > { %v723_v47 = vmul.f32 %v722_v40, %v720_v34  ;;  %v456_v54 = vsel %vm455_vm8, %v454_v44, %v453_v38  ;;  %v431_v55 = vmul.f32 %v430_v49, %v428_v41  ;;  %v745_v56 = vmul.f32 %v744_v50, %v407_v13  ;;  %v296_v38 = vld [vmem:[#allocation2] ss:$4 sm:$0x7]  ;;  %v585_v49 = vld [vmem:[#allocation2 + $0x2] ss:$4 sm:$0x7] }
  0xf7   : > { %382 = vrot.lane.b32.xlu1 %v380_v15, %s1282_s26  ;;  %511 = vrot.lane.b32.xlu0 %v509_v16, %s1282_s26  ;;  %v546_v58 = vmul.f32 %v545_v51, %v543_v46  ;;  %v565_v61 = vmul.f32 %v1507_v52, %v456_v54  ;;  %v650_v62 = vmul.f32 %v649_v57, %v426_v36  ;;  %v567_v1 = vstv %s1557_s27  ;;  %v768_v15 = vld [vmem:[#allocation2 + $0x7] ss:$4 sm:$0x7]  ;;  %v330_v20 = vpop.permute.xlu0 %329  ;;  %v396_v22 = vpop.permute.xlu1 %395  ;;  %s1631_s27 = sld [smem:[#allocation8 + $0x1]] }
  0xf8   : > { %v641_v63 = vmul.f32 %v640_v59, %v638_v53  ;;  %v748_v2 = vmul.f32 %v747_v60, %v745_v56  ;;  %v652_v3 = vstv %s1560_s30  ;;  %v458_v6 = vmul.f32 %v456_v54, %v1497_v42  ;;  %s1633_s30 = sld [smem:[#allocation8]] }
  0xf9   : > { %v568_v5 = vmul.f32 %v567_v1, %v565_v61  ;;  %v653_v7 = vmul.f32 %v652_v3, %v650_v62  ;;  %v757_v8 = vmul.f32 %v756_v4, %v426_v36  ;;  %v460_v52 = vstv %s974_s5  ;;  %v478_v36 = vld [vmem:[#allocation2 + $0x1] ss:$4 sm:$0x7]  ;;  %v692_v61 = vld [vmem:[#allocation2 + $0x3] ss:$4 sm:$0x7] }
  0xfa   : > { %v759_v9 = vstv %s1003_s21  ;;  %v672_v10 = vmul.f32 %v1502_v48, %v456_v54  ;;  %v461_v11 = vmul.f32 %v460_v52, %v458_v6  ;;  %v674_v14 = vstv %s994_s6  ;;  %s1641_s5 = sld [smem:[#allocation8 + $0x2]]  ;;  %s1652_s21 = sld [smem:[#allocation10 + $0x1]] }
  0xfb   : > { %606 = vrot.lane.b32.xlu1 %v604_v24, %s1281_s12  ;;  %713 = vrot.lane.b32.xlu0 %v711_v27, %s1281_s12  ;;  %s1284_s12 = smov 96   ;;  %v760_v13 = vmul.f32 %v759_v9, %v757_v8  ;;  %v779_v17 = vmul.f32 %v768_v15, %v456_v54  ;;  %v781_v18 = vstv %s1005_s9  ;;  %v596_v48 = vpop.permute.xlu0 %595  ;;  %v315_v24 = vpop.permute.xlu1 %314  ;;  %v490_v41 = vrot.slane %v489_v21, 1  ;;  %s1659_s6 = sld [smem:[#allocation8 + $0x3]] }
  0xfc   : > { %v675_v16 = vmul.f32 %v674_v14, %v672_v10  ;;  %v316_v32 = vrot.slane %v315_v24, 7  ;;  %v322_v46 = vstv %s321_s20  ;;  %v397_v51 = vrot.slane %v396_v22, 7  ;;  %s1007_s9 = sld [smem:[#allocation10 + $0x3]] }
  0xfd   : > { %v782_v19 = vmul.f32 %v781_v18, %v779_v17  ;;  %v597_v53 = vrot.slane %v596_v48, 1  ;;  %v491_v57 = vsel %vm332_vm5, %v489_v21, %v490_v41 }
  0xfe   : > { %v318_v35 = vsel %vm317_vm9, %v316_v32, %v315_v24 }
  0xff   : > { %618 = vrot.lane.b32.xlu1 %v616_v33, %s1282_s26  ;;  %536 = vrot.lane.b32.xlu0 %v534_v31, %s1283_s28  ;;  %v1580_v23 = vpop.permute.xlu0 %702  ;;  %v1584_v26 = vpop.permute.xlu1 %630  ;;  %v479_v39 = vmul.f32 %v478_v36, %v318_v35  ;;  %v586_v62 = vmul.f32 %v585_v49, %v318_v35  ;;  %v598_v6 = vsel %vm332_vm5, %v596_v48, %v597_v53 }
 0x100   : > { %v693_v9 = vmul.f32 %v692_v61, %v318_v35 }
 0x103   : > { %414 = vrot.lane.b32.xlu1 %v412_v43, %s1283_s28  ;;  %725 = vrot.lane.b32.xlu0 %v723_v47, %s1282_s26  ;;  %s1004_s26 = sld [smem:[#allocation7 + $0x1f]]  ;;  %v1582_v25 = vpop.permute.xlu0 %523  ;;  %v1588_v28 = vpop.permute.xlu1 %445  ;;  %v320_v43 = vmul.f32 %v318_v35, %v296_v38  ;;  %v331_v47 = vrot.slane %v330_v20, 1 }
 0x104   : > { %v525_v17 = vrot.slane %v1582_v25, 7 }
 0x106   : > { %v526_v41 = vsel %vm317_vm9, %v525_v17, %v1582_v25 }
 0x107   : > { %433 = vrot.lane.b32.xlu1 %v431_v55, %s1284_s12  ;;  %548 = vrot.lane.b32.xlu0 %v546_v58, %s1284_s12  ;;  %v1586_v27 = vpop.permute.xlu0 %737  ;;  %v1592_v30 = vpop.permute.xlu1 %666  ;;  %v323_v58 = vmul.f32 %v322_v46, %v320_v43 }
 0x109   : > { %v770_v12 = vstv %s1004_s26  ;;  %s1657_s26 = sld [smem:[#allocation10 + $0x2]] }
 0x10a   : > { %v771_v42 = vmul.f32 %v770_v12, %v768_v15  ;;  %v704_v15 = vrot.slane %v1580_v23, 1 }
 0x10b   : > { %643 = vrot.lane.b32.xlu1 %v641_v63, %s1283_s28  ;;  %750 = vrot.lane.b32.xlu0 %v748_v2, %s1283_s28  ;;  %v1590_v29 = vpop.permute.xlu0 %559  ;;  %s1597_s28 = sld [smem:[#allocation7 + $0x3]]  ;;  %v333_v63 = vsel %vm332_vm5, %v330_v20, %v331_v47  ;;  %v588_v2 = vstv %s1595_s23 }
 0x10c   : > { %v335_v10 = vadd.f32 %v333_v63, %v323_v58  ;;  %v589_v14 = vmul.f32 %v588_v2, %v586_v62  ;;  %v561_v61 = vrot.slane %v1590_v29, 7 }
 0x10e   : > { %v600_v36 = vadd.f32 %v598_v6, %v589_v14 }
 0x10f   : > { %655 = vrot.lane.b32.xlu1 %v653_v7, %s1284_s12  ;;  %570 = vrot.lane.b32.xlu0 %v568_v5, %s1285_s10  ;;  %v398_v5 = vsel %vm317_vm9, %v397_v51, %v396_v22 }
 0x111   : > { %v695_v3 = vstv %s1597_s28 }
 0x112   : > { %v696_v24 = vmul.f32 %v695_v3, %v693_v9  ;;  %v562_v9 = vsel %vm448_vm14, %v561_v61, %v1590_v29  ;;  %v668_v29 = vrot.slane %v1592_v30, 7 }
 0x113   : > { %463 = vrot.lane.b32.xlu1 %v461_v11, %s1285_s10  ;;  %762 = vrot.lane.b32.xlu0 %v760_v13, %s1284_s12  ;;  %s1649_s12 = sld [smem:[#allocation10]] }
 0x117   : > { %677 = vrot.lane.b32.xlu1 %v675_v16, %s1285_s10  ;;  %773 = vrot.lane.b32.xlu0 %v771_v42, %s1280_s8  ;;  %s975_s8 = sld [smem:[#allocation7 + $0x1]] }
 0x11b   : > { %784 = vrot.lane.b32.xlu1 %v782_v19, %s1285_s10  ;;  %s1021_s10 = sshll.u32 %s1333_s19, 7  ;;  %s833_s19 = scalar_lea.sflag [#allocation5], %s1458_s7 }
 0x11c   : > { %s1685_s28 = scalar_lea.hbm %s1733_s4, %s1021_s10 }
 0x11d   : > { %v481_v44 = vstv %s975_s8  ;;  %s252_s8 = scalar_lea.vmem [#allocation11], %s958_s11 }
 0x11e   : > { %v482_v54 = vmul.f32 %v481_v44, %v479_v39  ;;  %v705_v39 = vsel %vm332_vm5, %v1580_v23, %v704_v15  ;;  %s847_s20 = sshll.u32 %s252_s8, 4  ;;  %s1687_s20 = int_to_ptr.vmem [resolvable:$true] %s847_s20 }
 0x11f   : > { %s1192_s11 = scalar_lea.vmem %s1687_s20, 128 }
 0x120   : > { %v493_v7 = vadd.f32 %v491_v57, %v482_v54  ;;  %p1193_p12 = scmp.ne.s32.totalorder %s1687_s20, %s1192_s11 }
 0x122   : > { %p1194_p0 = pnand %p1193_p12, %p1413_p9 }
 0x124   : > { %p1195_p3 = pneg %p1194_p0 }
 0x165   : > { %v500_v31 = vpop.permute.xlu1 %499  ;;  %v365_v33 = vpop.permute.xlu0 %364 }
 0x166   : > { %v501_v50 = vrot.slane %v500_v31, 1  ;;  %v366_v55 = vrot.slane %v365_v33, 1 }
 0x168   : > { %v502_v4 = vsel %vm367_vm10, %v500_v31, %v501_v50  ;;  %v368_v8 = vsel %vm367_vm10, %v365_v33, %v366_v55  ;;  %v632_v31 = vrot.slane %v1584_v26, 7 }
 0x169   : > { %v383_v34 = vpop.permute.xlu1 %382  ;;  %v512_v37 = vpop.permute.xlu0 %511  ;;  %v504_v42 = vadd.f32 %v502_v4, %v493_v7  ;;  %v370_v18 = vadd.f32 %v368_v8, %v335_v10 }
 0x16a   : > { %v513_v59 = vrot.slane %v512_v37, 1  ;;  %v384_v1 = vrot.slane %v383_v34, 1  ;;  %v633_v51 = vsel %vm317_vm9, %v632_v31, %v1584_v26  ;;  %v739_v26 = vrot.slane %v1586_v27, 7 }
 0x16b   : > { %v471_v31 = vstv %s1633_s30 }
 0x16c   : > { %v514_v11 = vsel %vm385_vm11, %v512_v37, %v513_v59  ;;  %v386_v16 = vsel %vm385_vm11, %v383_v34, %v384_v1  ;;  %v707_v59 = vadd.f32 %v705_v39, %v696_v24  ;;  %v577_v24 = vstv %s1631_s27 }
 0x16d   : > { %v607_v40 = vpop.permute.xlu1 %606  ;;  %v1599_v45 = vpop.permute.xlu0 %713  ;;  %v516_v21 = vadd.f32 %v514_v11, %v504_v42  ;;  %v388_v32 = vadd.f32 %v386_v16, %v370_v18  ;;  %v740_v16 = vsel %vm317_vm9, %v739_v26, %v1586_v27 }
 0x16e   : > { %v608_v12 = vrot.slane %v607_v40, 1  ;;  %v715_v34 = vrot.slane %v1599_v45, 1 }
 0x16f   : > { %v528_v47 = vadd.f32 %v526_v41, %v516_v21  ;;  %v400_v53 = vadd.f32 %v398_v5, %v388_v32 }
 0x170   : > { %v609_v33 = vsel %vm367_vm10, %v607_v40, %v608_v12  ;;  %v716_v25 = vsel %vm367_vm10, %v1599_v45, %v715_v34 }
 0x171   : > { %v619_v56 = vpop.permute.xlu1 %618  ;;  %v537_v60 = vpop.permute.xlu0 %536  ;;  %v611_v46 = vadd.f32 %v609_v33, %v600_v36  ;;  %v718_v2 = vadd.f32 %v716_v25, %v707_v59 }
 0x172   : > { %v620_v19 = vrot.slane %v619_v56, 1  ;;  %v538_v20 = vrot.slane %v537_v60, 7 }
 0x174   : > { %v621_v43 = vsel %vm385_vm11, %v619_v56, %v620_v19  ;;  %v539_v44 = vsel %vm417_vm12, %v538_v20, %v537_v60  ;;  %v447_v60 = vrot.slane %v1588_v28, 7 }
 0x175   : > { %v415_v52 = vpop.permute.xlu1 %414  ;;  %v726_v13 = vpop.permute.xlu0 %725  ;;  %v623_v56 = vadd.f32 %v621_v43, %v611_v46  ;;  %v541_v57 = vadd.f32 %v539_v44, %v528_v47  ;;  %v684_v46 = vstv %s1641_s5 }
 0x176   : > { %v416_v48 = vrot.slane %v415_v52, 7  ;;  %v727_v49 = vrot.slane %v726_v13, 1  ;;  %v449_v12 = vsel %vm448_vm14, %v447_v60, %v1588_v28 }
 0x177   : > { %v635_v7 = vadd.f32 %v633_v51, %v623_v56  ;;  %v581_v56 = vstv %s1652_s21 }
 0x178   : > { %v418_v40 = vsel %vm417_vm12, %v416_v48, %v415_v52  ;;  %v728_v63 = vsel %vm385_vm11, %v726_v13, %v727_v49 }
 0x179   : > { %v434_v22 = vpop.permute.xlu1 %433  ;;  %v549_v35 = vpop.permute.xlu0 %548  ;;  %v420_v62 = vadd.f32 %v418_v40, %v400_v53  ;;  %v730_v10 = vadd.f32 %v728_v63, %v718_v2  ;;  %v475_v53 = vstv %s1649_s12 }
 0x17a   : > { %v435_v37 = vrot.slane %v434_v22, 7  ;;  %v550_v38 = vrot.slane %v549_v35, 7 }
 0x17c   : > { %v551_v54 = vsel %vm436_vm13, %v550_v38, %v549_v35  ;;  %v437_v58 = vsel %vm436_vm13, %v435_v37, %v434_v22  ;;  %v742_v22 = vadd.f32 %v740_v16, %v730_v10  ;;  %v669_v35 = vsel %vm448_vm14, %v668_v29, %v1592_v30  ;;  %v804_v10 = vld [vmem:[%s1464_s13] ss:$4 sm:$0x3] }
 0x17d   : > { %v644_v50 = vpop.permute.xlu1 %643  ;;  %v751_v55 = vpop.permute.xlu0 %750  ;;  %v553_v1 = vadd.f32 %v551_v54, %v541_v57  ;;  %v439_v3 = vadd.f32 %v437_v58, %v420_v62  ;;  %v688_v57 = vstv %s1657_s26  ;;  %v791_v58 = vstv %s1659_s6 }
 0x17e   : > { %v645_v23 = vrot.slane %v644_v50, 7  ;;  %v752_v8 = vrot.slane %v751_v55, 7 }
 0x17f   : > { %v564_v14 = vadd.f32 %v562_v9, %v553_v1  ;;  %v451_v17 = vadd.f32 %v449_v12, %v439_v3  ;;  %v1011_v12 = vld [vmem:[%s1464_s13 + $0x2] ss:$4 sm:$0x3] }
 0x180   : > { %v646_v4 = vsel %vm417_vm12, %v645_v23, %v644_v50  ;;  %v753_v20 = vsel %vm417_vm12, %v752_v8, %v751_v55 }
 0x181   : > { %v656_v45 = vpop.permute.xlu1 %655  ;;  %v571_v6 = vpop.permute.xlu0 %570  ;;  %v648_v13 = vadd.f32 %v646_v4, %v635_v7  ;;  %v755_v36 = vadd.f32 %v753_v20, %v742_v22 }
 0x182   : > { %v657_v5 = vrot.slane %v656_v45, 7  ;;  %v572_v52 = vrot.slane %v571_v6, 7 }
 0x184   : > { %v658_v11 = vsel %vm436_vm13, %v657_v5, %v656_v45  ;;  %v573_v15 = vsel %vm466_vm15, %v572_v52, %v571_v6  ;;  %v795_v45 = vstv %s1007_s9 }
 0x185   : > { %v464_v42 = vpop.permute.xlu1 %463  ;;  %v763_v19 = vpop.permute.xlu0 %762  ;;  %v660_v28 = vadd.f32 %v658_v11, %v648_v13  ;;  %v575_v21 = vadd.f32 %v573_v15, %v564_v14  ;;  %v1009_v11 = vld [vmem:[%s1464_s13 + $0x1] ss:$4 sm:$0x3]  ;;  %v1013_v14 = vld [vmem:[%s1464_s13 + $0x3] ss:$4 sm:$0x3] }
 0x186   : > { %v465_v18 = vrot.slane %v464_v42, 7  ;;  %v764_v48 = vrot.slane %v763_v19, 7  ;;  %s1286_s13 = smov [#allocation11]  }
 0x187   : > { %v578_v39 = vadd.f32 %v577_v24, %v575_v21  ;;  %v671_v43 = vadd.f32 %v669_v35, %v660_v28  ;;  %s1196_s27 = sshll.u32 %s1286_s13, 4  ;;  %s1197_s27 = int_to_ptr.vmem [resolvable:$false] %s1196_s27 }
 0x188   : > { %v467_v27 = vsel %vm466_vm15, %v465_v18, %v464_v42  ;;  %v765_v34 = vsel %vm436_vm13, %v764_v48, %v763_v19  ;;  %s1198_s30 = scalar_lea.vmem %s1197_s27, 256  ;;  %p1199_p2 = scmp.lt.s32.totalorder %s1687_s20, %s1197_s27 }
 0x189   : > { %v469_v32 = vadd.f32 %v467_v27, %v451_v17  ;;  %v678_v33 = vpop.permute.xlu1 %677  ;;  %v774_v38 = vpop.permute.xlu0 %773  ;;  %v767_v49 = vadd.f32 %v765_v34, %v755_v36  ;;  %v579_v23 = vmax.f32 %v578_v39, 0.0  ;;  %p1200_p4 = scmp.lt.s32.totalorder %s1198_s30, %s1192_s11 }
 0x18a   : > { %v679_v37 = vrot.slane %v678_v33, 7  ;;  %v775_v44 = vrot.slane %v774_v38, 7 }
 0x18b   : > { %v472_v41 = vadd.f32 %v471_v31, %v469_v32  ;;  %v582_v26 = vmul.f32 %v581_v56, %v579_v23  ;;  %p1201_p6 = por %p1200_p4, %p1199_p2 }
 0x18c   : > { %v680_v47 = vsel %vm466_vm15, %v679_v37, %v678_v33  ;;  %v776_v50 = vsel %vm448_vm14, %v775_v44, %v774_v38 }
 0x18d   : > { %v473_v40 = vmax.f32 %v472_v41, 0.0  ;;  %v682_v30 = vadd.f32 %v680_v47, %v671_v43  ;;  %v785_v51 = vpop.permute.xlu1 %784  ;;  %v778_v25 = vadd.f32 %v776_v50, %v767_v49  ;;  %p1202_p8 = pnand %p1201_p6, %p1195_p3 }
 0x18e   : > { %v786_v54 = vrot.slane %v785_v51, 7 }
 0x18f   : > { %v685_v55 = vadd.f32 %v684_v46, %v682_v30  ;;  %v476_v60 = vmul.f32 %v475_v53, %v473_v40 }
 0x190   : > { %v787_v59 = vsel %vm466_vm15, %v786_v54, %v785_v51 }
 0x191   : > { %v686_v61 = vmax.f32 %v685_v55, 0.0  ;;  %v789_v62 = vadd.f32 %v787_v59, %v778_v25  ;;  %v583_v2 = vadd.f32 %v582_v26, %v476_v60 }
 0x193   : > { %v689_v63 = vmul.f32 %v688_v57, %v686_v61  ;;  %v792_v1 = vadd.f32 %v791_v58, %v789_v62 }
 0x195   : > { %v793_v3 = vmax.f32 %v792_v1, 0.0  ;;  %v690_v4 = vadd.f32 %v689_v63, %v583_v2 }
 0x197   : > { %v796_v5 = vmul.f32 %v795_v45, %v793_v3 }
 0x199   : > { %v797_v6 = vadd.f32 %v796_v5, %v690_v4 }
 0x19b   : > { %v1008_v7 = vmul.f32 -1.442695, %v797_v6 }
 0x19d   : > { %1113 = vpow2.f32 %v1008_v7 }
 0x1a7   : > { %v1114_v8 = vpop.eup %1113 }
 0x1a8   : > { %v801_v52 = vadd.f32 1.0, %v1114_v8 }
 0x1aa   : > { %1115 = vrcp.f32 %v801_v52 }
 0x1b4   : > { %v1116_v9 = vpop.eup %1115 }
 0x1b5   : > { %806 = vrot.lane.b32.xlu0 %v1116_v9, %s1278_s29 }
 0x227   : > { %v807_v13 = vpop.permute.xlu0 %806 }
 0x228   : > { %v808_v15 = vrot.slane %v807_v13, 1 }
 0x22a   : > { %v809_v42 = vsel %vm455_vm8, %v807_v13, %v808_v15 }
 0x22b   : > { %v811_v16 = vmul.f32 %v809_v42, %v804_v10  ;;  %v819_v29 = vmul.f32 %v1009_v11, %v809_v42  ;;  %v824_v17 = vmul.f32 %v1011_v12, %v809_v42  ;;  %v829_v18 = vmul.f32 %v1013_v14, %v809_v42 }
 0x22d   : > { %816 = vst.msk [vmem:[%s252_s8] ss:$4 sm:$0x3] %vm814_vm0, %v811_v16  ;;  %1010 = vst.msk [vmem:[%s252_s8 + $0x1] ss:$4 sm:$0x3] %vm814_vm0, %v819_v29 }
 0x22e   : > { %1012 = vst.msk [vmem:[%s252_s8 + $0x2] ss:$4 sm:$0x3] %vm814_vm0, %v824_v17  ;;  %1014 = vst.msk [vmem:[%s252_s8 + $0x3] ss:$4 sm:$0x3] %vm814_vm0, %v829_v18 }
 0x22f   : > { %1205 = shalt.err (!%p1202_p8)
}
 0x230   : > { %s1206_s7 = scalar_lea.hbm %s1685_s28, 128  ;;  %s1210_s21 = scalar_lea.hbm %s1733_s4, 256 }
 0x231   : > { %p1207_p5 = scmp.ne.s32.totalorder %s1685_s28, %s1206_s7  ;;  %p1211_p13 = scmp.lt.u32.totalorder %s1685_s28, %s1733_s4 }
 0x232   : > { %p1212_p7 = scmp.lt.u32.totalorder %s1210_s21, %s1206_s7  ;;  %p1214_p12 = scmp.lt.u32.totalorder %s1206_s7, %s1685_s28 }
 0x233   : > { %p1208_p1 = pnand %p1207_p5, %p1413_p9 }
 0x234   : > { %p1213_p10 = por %p1212_p7, %p1211_p13 }
 0x235   : > { %p1209_p11 = pneg %p1208_p1 }
 0x236   : > { %p1215_p0 = por %p1214_p12, %p1213_p10 }
 0x238   : > { %p1216_p3 = pnand %p1215_p0, %p1209_p11 }
 0x23a   : > { %1219 = shalt.err (!%p1216_p3)
}
 0x23b   : > { %1036 = dma.vmem_to_hbm [thread:$0]  (%p1413_p9), %s1687_s20, 128, %s1685_s28, %s833_s19  }
 0x23c PF: > { %s859_s9 = sand.u32 1, %s1254_s15   ;;  %p1750_p2 = scmp.ne.s32.totalorder %s1738_s22, 0 }
 0x23d   : > { %p1751_p4 = scmp.ge.s32.totalorder %s1266_s18, 2  ;;  %s860_s10 = scalar_lea.sflag [#allocation5], %s859_s9 }
 0x23f   : > { %p1053_p6 = pnand %p1751_p4, %p1750_p2 }
 0x241   : > { %1249 = dma.done.wait (!%p1053_p6), %s860_s10, 128  }
 0x242   : > { %1251 = vsyncadd (!%p1053_p6), %s860_s10, 4294967168  ;;  %p19_p8 = scmp.ge.s32.totalorder %s1399_s14, 4   ;;  %s1752_s15 = smov %s1258_s16 }
 0x243   : > { %s1753_s16 = smov %s1262_s17  ;;  %s1754_s17 = smov %s1409_s24 }
 0x244   : > { %s1755_s18 = smov %s1399_s14  ;;  %21 = sbr.rel (!%p19_p8) target bundleno = 7 (0x7), region = 111 }
 0x24b   :  { %865 = vsyncpa [#allocation4], 1 }
 0x24c   :  { %867 = vsyncpa [#allocation4 + $0x1], 1 }
 0x24d   :  { %868 = vsyncpa [#allocation5], 1 }
 0x24e   :  { %870 = vsyncpa [#allocation5 + $0x1], 1 }
 0x24f   :  { %871 = vsyncpa [#allocation6], 1 }
 0x250   :  { %873 = vsyncpa [#allocation6 + $0x1], 1 }
 0x251   :  { %874 = vsyncpa [#allocation9], 1 }

</bundles_post_ra>
